<compile_context>
chip_gen: v6e
topology: v6e:2x2x1
jax: 0.10.0
libtpu: 0.0.40
codegen_flags: <defaults>
</compile_context>

<pallas_src>
import functools

import jax
import jax.numpy as jnp
import numpy as np
from jax.experimental import pallas as pl
from jax.experimental.pallas import tpu as pltpu

EPS_LN = 1e-5      # FusedLayerNorm(eps=1e-5)
EPS_ATTN = 1e-6    # softmax_with_policy eps

# parameter ordering (as passed to the kernel after decisions, x)
PARAM_ORDER = [
    "lnv_w", "lnv_b",                               # ln_vision
    "n0_w", "n0_b", "w_qkv", "w_proj0",             # norm0 + causal self-attn
    "n1_w", "n1_b", "w_q", "w_k", "w_v", "w_proj1", # norm1 + cross-attn
    "n2_w", "n2_b", "w_fc1", "b_fc1", "w_fc2", "b_fc2",  # norm2 + MLP
    "nf_w", "nf_b",                                 # final norm
]

# weights fed to the MXU -> stored/passed as bf16 (accumulation stays f32)
MATMUL_WEIGHTS = frozenset(
    {"w_qkv", "w_proj0", "w_q", "w_k", "w_v", "w_proj1", "w_fc1", "w_fc2"})


def _ln(h, w, b):
    mu = jnp.mean(h, axis=-1, keepdims=True)
    var = jnp.mean(jnp.square(h - mu), axis=-1, keepdims=True)
    return (h - mu) * jax.lax.rsqrt(var + EPS_LN) * w + b


def token_merger_kernel(dec_ref, x_ref,
                        lnv_w, lnv_b,
                        n0_w, n0_b, w_qkv, w_proj0,
                        n1_w, n1_b, w_q, w_k, w_v, w_proj1,
                        n2_w, n2_b, w_fc1, b_fc1, w_fc2, b_fc2,
                        nf_w, nf_b,
                        o_ref,
                        attn_out,              # (N, C) VMEM scratch for head outputs
                        *, num_heads, key_block):
    x = x_ref[0]          # (N, C) f32
    pol = dec_ref[0]      # (1, N) f32
    N, C = x.shape
    d = C // num_heads
    scale = d ** -0.5
    bf16 = jnp.bfloat16
    n_kb = N // key_block

    fuse = 1.0 - pol      # (1, N) cross-attention policy

    def self_mask(lo_k):
        # (pol + (1-pol)*eye) * causal  ==  where(col<=row, where(col==row, 1, pol), 0)
        # Fused selects on one (N, KB) tile; the iotas die immediately.
        rows = jax.lax.broadcasted_iota(jnp.int32, (N, key_block), 0)
        cols = jax.lax.broadcasted_iota(jnp.int32, (N, key_block), 1) + lo_k
        pol_blk = pol[:, lo_k:lo_k + key_block]                    # (1, KB)
        return jnp.where(cols <= rows,
                         jnp.where(cols == rows, 1.0, pol_blk),
                         0.0)

    def cross_mask(lo_k):
        # broadcast once per key block (shared by every head in the inner loop)
        return jnp.broadcast_to(fuse[:, lo_k:lo_k + key_block], (N, key_block))

    def attention(q_all, k_all, v_all, w_proj, mask_fn):
        """Multi-head policy attention, key-block tiled with online softmax.

        q_all is pre-scaled bf16.  Per-head live state is (N,1)+(N,1)+(N,d);
        the (N, KB) score/exp/mask tiles are the only large attention
        intermediates.  Head outputs land in the attn_out scratch at static
        lane offsets and are projected with a single full-K (= C) matmul.
        """
        m = [jnp.full((N, 1), -jnp.inf, jnp.float32) for _ in range(num_heads)]
        l = [jnp.zeros((N, 1), jnp.float32) for _ in range(num_heads)]
        acc = [jnp.zeros((N, d), jnp.float32) for _ in range(num_heads)]

        for kb in range(n_kb):
            lo_k = kb * key_block
            mask = mask_fn(lo_k)                       # (N, KB), built once/block
            # TODO(synk): with query tiling, fully causal-masked key blocks
            # (col_block > row_block) would be skipped here.
            for hh in range(num_heads):
                lo = hh * d
                # q . k^T via transposed-RHS contraction (no XLU transpose)
                s = jax.lax.dot_general(
                    q_all[:, lo:lo + d],
                    k_all[lo_k:lo_k + key_block, lo:lo + d],
                    (((1,), (1,)), ((), ())),
                    preferred_element_type=jnp.float32)            # (N, KB)
                m_new = jnp.maximum(m[hh], jnp.max(s, axis=-1, keepdims=True))
                alpha = jnp.exp(m[hh] - m_new)
                e = jnp.exp(s - m_new) * mask
                l[hh] = alpha * l[hh] + jnp.sum(e, axis=-1, keepdims=True)
                acc[hh] = alpha * acc[hh] + jnp.dot(
                    e.astype(bf16), v_all[lo_k:lo_k + key_block, lo:lo + d],
                    preferred_element_type=jnp.float32)            # (N, d)
                m[hh] = m_new

        # (e + eps/N) / (l + eps) @ v  ==  (e@v + (eps/N) * sum_k v) / (l + eps)
        v_sum = jnp.sum(v_all.astype(jnp.float32), axis=0, keepdims=True)  # (1, C)
        for hh in range(num_heads):
            lo = hh * d
            inv = pl.reciprocal(l[hh] + EPS_ATTN, approx=True)     # EUP slot
            oh = (acc[hh] + (EPS_ATTN / N) * v_sum[:, lo:lo + d]) * inv
            attn_out[:, lo:lo + d] = oh.astype(attn_out.dtype)

        # single projection with full contraction depth K = C
        return jnp.dot(attn_out[...].astype(bf16), w_proj,
                       preferred_element_type=jnp.float32)

    # ---- token causal self-attention ----
    h = _ln(x, n0_w[...], n0_b[...]).astype(bf16)
    qkv = jnp.dot(h, w_qkv[...], preferred_element_type=jnp.float32)   # (N, 3C)
    q_all = (qkv[:, 0:C] * scale).astype(bf16)   # 1/sqrt(d) folded into q
    k_all = qkv[:, C:2 * C].astype(bf16)
    v_all = qkv[:, 2 * C:3 * C].astype(bf16)
    x = x + attention(q_all, k_all, v_all, w_proj0[...], self_mask)

    # ---- token cross-attention (keys/values from ln_vision of original x) ----
    h = _ln(x, n1_w[...], n1_b[...]).astype(bf16)
    q = (jnp.dot(h, w_q[...], preferred_element_type=jnp.float32) * scale
         ).astype(bf16)
    # ln_vision computed lazily (re-reads original x from VMEM) so it is never
    # live across the self-attention block.
    x0 = _ln(x_ref[0], lnv_w[...], lnv_b[...]).astype(bf16)
    k = jnp.dot(x0, w_k[...], preferred_element_type=jnp.float32).astype(bf16)
    v = jnp.dot(x0, w_v[...], preferred_element_type=jnp.float32).astype(bf16)
    x = x + attention(q, k, v, w_proj1[...], cross_mask)

    # ---- MLP ----
    h = _ln(x, n2_w[...], n2_b[...]).astype(bf16)
    mh = jnp.dot(h, w_fc1[...], preferred_element_type=jnp.float32) + b_fc1[...]
    # tanh-approx GELU routes through the (otherwise idle) EUP; <~3e-3 off erf.
    mh = jax.nn.gelu(mh, approximate=True).astype(bf16)
    mh = jnp.dot(mh, w_fc2[...], preferred_element_type=jnp.float32) + b_fc2[...]
    x = x + mh

    # ---- final norm ----
    o_ref[0] = _ln(x, nf_w[...], nf_b[...]).astype(o_ref.dtype)


def _pick_key_block(N):
    """Key-block size for the online-softmax attention loop (must divide N)."""
    if N <= 512:
        return N
    for kb in (512, 256, 128):
        if N % kb == 0:
            return kb
    return N


def _vmem_budget_bytes(N, C, hidden, key_block, weights):
    """Weights are single-buffered (Buffered(1)); only x/out/decisions blocks
    are double-buffered.  Modest 1.25x headroom (no double hedging), capped at
    ~90% of the chip's per-core VMEM so the request never exceeds what v7x's
    64 MiB can physically provide; floored at 32 MiB (safe on all generations)."""
    w_bytes = sum(int(np.prod(w.shape)) * w.dtype.itemsize for w in weights)
    io_bytes = 2 * (2 * N * C * 4 + N * 4)            # x, out, decisions blocks
    act_bytes = (4 * 4 * N * C                        # a few live (N,C) f32 acts
                 + 2 * N * 3 * C                      # bf16 q/k/v
                 + 4 * N * C                          # head-output scratch (<= f32)
                 + 4 * N * C                          # per-head f32 accumulators
                 + 3 * 4 * N * key_block              # score/exp/mask tiles
                 + 6 * N * hidden)                    # MLP hidden (f32 + bf16)
    est = int(1.25 * (w_bytes + io_bytes + act_bytes))
    try:
        cap = int(0.9 * pltpu.get_tpu_info().vmem_capacity_bytes)
    except Exception:
        cap = int(0.9 * 64 * 1024 * 1024)             # conservative: v7x per-core
    return max(32 * 1024 * 1024, min(est, cap))


def token_merger(x, decisions, params, *, num_heads):
    B, N, C = x.shape
    dec3 = decisions.astype(jnp.float32).reshape(B, 1, N)
    key_block = _pick_key_block(N)

    weights = []
    for name in PARAM_ORDER:
        w = params[name]
        if name in MATMUL_WEIGHTS:
            w = w.astype(jnp.bfloat16)     # halves weight DMA + VMEM footprint
        weights.append(w)

    in_specs = [
        pl.BlockSpec((1, 1, N), lambda b: (b, 0, 0)),   # decisions (B,1,N)
        pl.BlockSpec((1, N, C), lambda b: (b, 0, 0)),   # x (B,N,C)
    ] + [
        # constant block index across the grid -> the second pipeline buffer is
        # dead weight; single-buffer every weight.
        pl.BlockSpec(w.shape, lambda b, n=w.ndim: (0,) * n,
                     pipeline_mode=pl.Buffered(1))
        for w in weights
    ]
    out_spec = pl.BlockSpec((1, N, C), lambda b: (b, 0, 0))

    hidden = params["w_fc1"].shape[1]
    vmem_limit = _vmem_budget_bytes(N, C, hidden, key_block, weights)

    # bf16 head-output scratch when per-head slices are lane aligned
    # (production d % 128 == 0); f32 otherwise (toy shapes) for robust stores.
    d = C // num_heads
    scratch_dtype = jnp.bfloat16 if d % 128 == 0 else jnp.float32

    return pl.pallas_call(
        functools.partial(token_merger_kernel, num_heads=num_heads,
                          key_block=key_block),
        out_shape=jax.ShapeDtypeStruct((B, N, C), x.dtype),
        grid=(B,),
        in_specs=in_specs,
        out_specs=out_spec,
        scratch_shapes=[pltpu.VMEM((N, C), scratch_dtype)],
        compiler_params=pltpu.CompilerParams(
            dimension_semantics=("parallel",),
            vmem_limit_bytes=vmem_limit),
    )(dec3, x, *weights)


def init_params(key, dim, num_heads, mlp_ratio=4.0):
    hidden = int(dim * mlp_ratio)
    ks = jax.random.split(key, 8)

    def lin(k, fan_in, fan_out):
        # trunc_normal_(std=0.02); truncation not material for a synthetic kernel
        return (0.02 * jax.random.normal(k, (fan_in, fan_out))).astype(jnp.float32)

    ones = lambda: jnp.ones((1, dim), jnp.float32)
    zeros = lambda n=dim: jnp.zeros((1, n), jnp.float32)

    return {
        "lnv_w": ones(), "lnv_b": zeros(),
        "n0_w": ones(), "n0_b": zeros(),
        "w_qkv": lin(ks[0], dim, 3 * dim),
        "w_proj0": lin(ks[1], dim, dim),
        "n1_w": ones(), "n1_b": zeros(),
        "w_q": lin(ks[2], dim, dim),
        "w_k": lin(ks[3], dim, dim),
        "w_v": lin(ks[4], dim, dim),
        "w_proj1": lin(ks[5], dim, dim),
        "n2_w": ones(), "n2_b": zeros(),
        "w_fc1": lin(ks[6], dim, hidden), "b_fc1": zeros(hidden),
        "w_fc2": lin(ks[7], hidden, dim), "b_fc2": zeros(),
        "nf_w": ones(), "nf_b": zeros(),
    }


def token_merger_ref(x, decisions, p, *, num_heads):
    """Pure-JAX f32 reference mirroring the PyTorch forward (dropout=0, depth=1)."""
    def ln(h, w, b):
        mu = h.mean(-1, keepdims=True)
        var = ((h - mu) ** 2).mean(-1, keepdims=True)
        return (h - mu) / jnp.sqrt(var + EPS_LN) * w + b

    B, N, C = x.shape
    d = C // num_heads
    scale = d ** -0.5
    pol = decisions.astype(x.dtype)
    eye = jnp.eye(N, dtype=x.dtype)
    seq = jnp.arange(N)
    causal = (seq[None, :] <= seq[:, None]).astype(x.dtype)

    x_origin = ln(x, p["lnv_w"], p["lnv_b"])

    # causal self-attn
    h = ln(x, p["n0_w"], p["n0_b"])
    qkv = h @ p["w_qkv"]
    q, k, v = jnp.split(qkv, 3, axis=-1)
    q = q.reshape(B, N, num_heads, d).transpose(0, 2, 1, 3)
    k = k.reshape(B, N, num_heads, d).transpose(0, 2, 1, 3)
    v = v.reshape(B, N, num_heads, d).transpose(0, 2, 1, 3)
    attn = (q @ k.transpose(0, 1, 3, 2)) * scale
    ap = (pol[:, None, None, :] + (1 - pol[:, None, None, :]) * eye) * causal
    mx = attn.max(-1, keepdims=True)
    attn = jnp.exp(attn - mx) * ap
    attn = (attn + EPS_ATTN / N) / (attn.sum(-1, keepdims=True) + EPS_ATTN)
    out = (attn @ v).transpose(0, 2, 1, 3).reshape(B, N, C)
    x = x + out @ p["w_proj0"]

    # cross-attn
    h = ln(x, p["n1_w"], p["n1_b"])
    q = (h @ p["w_q"]).reshape(B, N, num_heads, d).transpose(0, 2, 1, 3)
    k = (x_origin @ p["w_k"]).reshape(B, N, num_heads, d).transpose(0, 2, 1, 3)
    v = (x_origin @ p["w_v"]).reshape(B, N, num_heads, d).transpose(0, 2, 1, 3)
    attn = (q @ k.transpose(0, 1, 3, 2)) * scale
    fuse = (1 - pol)[:, None, None, :]
    mx = attn.max(-1, keepdims=True)
    attn = jnp.exp(attn - mx) * fuse
    attn = (attn + EPS_ATTN / N) / (attn.sum(-1, keepdims=True) + EPS_ATTN)
    out = (attn @ v).transpose(0, 2, 1, 3).reshape(B, N, C)
    x = x + out @ p["w_proj1"]

    # mlp
    h = ln(x, p["n2_w"], p["n2_b"])
    m = jax.nn.gelu(h @ p["w_fc1"] + p["b_fc1"], approximate=False)
    x = x + m @ p["w_fc2"] + p["b_fc2"]

    return ln(x, p["nf_w"], p["nf_b"])


if __name__ == "__main__":
    # TODO(synk): depth is fixed to 1 (module default); deeper stacks would pass
    # stacked per-block weights and loop inside the wrapper.
    B, N, C = 2, 8, 32
    NUM_HEADS = 4

    root = jax.random.PRNGKey(0)
    k_x, k_dec, k_p = jax.random.split(root, 3)

    x = jax.random.normal(k_x, (B, N, C), dtype=jnp.float32)
    decisions = jax.random.bernoulli(k_dec, 0.5, (B, N)).astype(jnp.float32)
    params = init_params(k_p, C, NUM_HEADS)

    out = jax.block_until_ready(
        token_merger(x, decisions, params, num_heads=NUM_HEADS))

    ref = jax.block_until_ready(
        token_merger_ref(x, decisions, params, num_heads=NUM_HEADS))

    err = float(jnp.max(jnp.abs(out - ref)))
    assert np.isfinite(np.asarray(out)).all(), "non-finite output"
    assert err < 5e-2, f"mismatch vs reference, max abs err = {err}"

    print("KERNEL_OK")
</pallas_src>

<mosaic_0001>
module attributes {stable_mosaic.version = 11 : i64} {
  func.func @token_merger_kernel(%arg0: i32, %arg1: memref<1x1x8xf32, #tpu.memory_space<vmem>>, %arg2: memref<1x8x32xf32, #tpu.memory_space<vmem>>, %arg3: memref<1x32xf32, #tpu.memory_space<vmem>>, %arg4: memref<1x32xf32, #tpu.memory_space<vmem>>, %arg5: memref<1x32xf32, #tpu.memory_space<vmem>>, %arg6: memref<1x32xf32, #tpu.memory_space<vmem>>, %arg7: memref<32x96xbf16, #tpu.memory_space<vmem>>, %arg8: memref<32x32xbf16, #tpu.memory_space<vmem>>, %arg9: memref<1x32xf32, #tpu.memory_space<vmem>>, %arg10: memref<1x32xf32, #tpu.memory_space<vmem>>, %arg11: memref<32x32xbf16, #tpu.memory_space<vmem>>, %arg12: memref<32x32xbf16, #tpu.memory_space<vmem>>, %arg13: memref<32x32xbf16, #tpu.memory_space<vmem>>, %arg14: memref<32x32xbf16, #tpu.memory_space<vmem>>, %arg15: memref<1x32xf32, #tpu.memory_space<vmem>>, %arg16: memref<1x32xf32, #tpu.memory_space<vmem>>, %arg17: memref<32x128xbf16, #tpu.memory_space<vmem>>, %arg18: memref<1x128xf32, #tpu.memory_space<vmem>>, %arg19: memref<128x32xbf16, #tpu.memory_space<vmem>>, %arg20: memref<1x32xf32, #tpu.memory_space<vmem>>, %arg21: memref<1x32xf32, #tpu.memory_space<vmem>>, %arg22: memref<1x32xf32, #tpu.memory_space<vmem>>, %arg23: memref<1x8x32xf32, #tpu.memory_space<vmem>>, %arg24: memref<8x32xf32, #tpu.memory_space<vmem>>) attributes {dimension_semantics = [#tpu.dimension_semantics<parallel>], iteration_bounds = array<i64: 2>, scalar_prefetch = 0 : i64, scratch_operands = 1 : i64, tpu.core_type = #tpu.core_type<tc>, window_params = [{transform_indices = @transform_0, window_bounds = array<i64: 1, 1, 8>}, {transform_indices = @transform_1, window_bounds = array<i64: 1, 8, 32>}, {pipeline_mode = #tpu.pipeline_mode<synchronous>, transform_indices = @transform_2, window_bounds = array<i64: 1, 32>}, {pipeline_mode = #tpu.pipeline_mode<synchronous>, transform_indices = @transform_3, window_bounds = array<i64: 1, 32>}, {pipeline_mode = #tpu.pipeline_mode<synchronous>, transform_indices = @transform_4, window_bounds = array<i64: 1, 32>}, {pipeline_mode = #tpu.pipeline_mode<synchronous>, transform_indices = @transform_5, window_bounds = array<i64: 1, 32>}, {pipeline_mode = #tpu.pipeline_mode<synchronous>, transform_indices = @transform_6, window_bounds = array<i64: 32, 96>}, {pipeline_mode = #tpu.pipeline_mode<synchronous>, transform_indices = @transform_7, window_bounds = array<i64: 32, 32>}, {pipeline_mode = #tpu.pipeline_mode<synchronous>, transform_indices = @transform_8, window_bounds = array<i64: 1, 32>}, {pipeline_mode = #tpu.pipeline_mode<synchronous>, transform_indices = @transform_9, window_bounds = array<i64: 1, 32>}, {pipeline_mode = #tpu.pipeline_mode<synchronous>, transform_indices = @transform_10, window_bounds = array<i64: 32, 32>}, {pipeline_mode = #tpu.pipeline_mode<synchronous>, transform_indices = @transform_11, window_bounds = array<i64: 32, 32>}, {pipeline_mode = #tpu.pipeline_mode<synchronous>, transform_indices = @transform_12, window_bounds = array<i64: 32, 32>}, {pipeline_mode = #tpu.pipeline_mode<synchronous>, transform_indices = @transform_13, window_bounds = array<i64: 32, 32>}, {pipeline_mode = #tpu.pipeline_mode<synchronous>, transform_indices = @transform_14, window_bounds = array<i64: 1, 32>}, {pipeline_mode = #tpu.pipeline_mode<synchronous>, transform_indices = @transform_15, window_bounds = array<i64: 1, 32>}, {pipeline_mode = #tpu.pipeline_mode<synchronous>, transform_indices = @transform_16, window_bounds = array<i64: 32, 128>}, {pipeline_mode = #tpu.pipeline_mode<synchronous>, transform_indices = @transform_17, window_bounds = array<i64: 1, 128>}, {pipeline_mode = #tpu.pipeline_mode<synchronous>, transform_indices = @transform_18, window_bounds = array<i64: 128, 32>}, {pipeline_mode = #tpu.pipeline_mode<synchronous>, transform_indices = @transform_19, window_bounds = array<i64: 1, 32>}, {pipeline_mode = #tpu.pipeline_mode<synchronous>, transform_indices = @transform_20, window_bounds = array<i64: 1, 32>}, {pipeline_mode = #tpu.pipeline_mode<synchronous>, transform_indices = @transform_21, window_bounds = array<i64: 1, 32>}, {transform_indices = @transform_22, window_bounds = array<i64: 1, 8, 32>}]} {
    %c0 = arith.constant 0 : index
    %c0_0 = arith.constant 0 : index
    %c0_1 = arith.constant 0 : index
    %0 = vector.load %arg2[%c0, %c0_0, %c0_1] : memref<1x8x32xf32, #tpu.memory_space<vmem>>, vector<1x8x32xf32>
    %1 = vector.shape_cast %0 : vector<1x8x32xf32> to vector<8x32xf32>
    %c0_2 = arith.constant 0 : index
    %c0_3 = arith.constant 0 : index
    %c0_4 = arith.constant 0 : index
    %2 = vector.load %arg1[%c0_2, %c0_3, %c0_4] : memref<1x1x8xf32, #tpu.memory_space<vmem>>, vector<1x1x8xf32>
    %3 = vector.shape_cast %2 : vector<1x1x8xf32> to vector<1x8xf32>
    %cst = arith.constant 1.000000e+00 : f32
    %4 = vector.broadcast %cst : f32 to vector<1x8xf32>
    %5 = arith.subf %4, %3 : vector<1x8xf32>
    %c0_5 = arith.constant 0 : index
    %c0_6 = arith.constant 0 : index
    %6 = vector.load %arg5[%c0_5, %c0_6] : memref<1x32xf32, #tpu.memory_space<vmem>>, vector<1x32xf32>
    %c0_7 = arith.constant 0 : index
    %c0_8 = arith.constant 0 : index
    %7 = vector.load %arg6[%c0_7, %c0_8] : memref<1x32xf32, #tpu.memory_space<vmem>>, vector<1x32xf32>
    %cst_9 = arith.constant dense<0.000000e+00> : vector<8xf32>
    %8 = vector.multi_reduction <add>, %1, %cst_9 [1] : vector<8x32xf32> to vector<8xf32>
    %9 = vector.shape_cast %8 : vector<8xf32> to vector<8x1xf32>
    %cst_10 = arith.constant 3.200000e+01 : f32
    %10 = vector.broadcast %cst_10 : f32 to vector<8x1xf32>
    %11 = arith.divf %9, %10 : vector<8x1xf32>
    %12 = vector.broadcast %11 : vector<8x1xf32> to vector<8x32xf32>
    %13 = arith.subf %1, %12 : vector<8x32xf32>
    %14 = arith.mulf %13, %13 : vector<8x32xf32>
    %cst_11 = arith.constant dense<0.000000e+00> : vector<8xf32>
    %15 = vector.multi_reduction <add>, %14, %cst_11 [1] : vector<8x32xf32> to vector<8xf32>
    %16 = vector.shape_cast %15 : vector<8xf32> to vector<8x1xf32>
    %cst_12 = arith.constant 3.200000e+01 : f32
    %17 = vector.broadcast %cst_12 : f32 to vector<8x1xf32>
    %18 = arith.divf %16, %17 : vector<8x1xf32>
    %19 = vector.broadcast %11 : vector<8x1xf32> to vector<8x32xf32>
    %20 = arith.subf %1, %19 : vector<8x32xf32>
    %cst_13 = arith.constant 9.99999974E-6 : f32
    %21 = vector.broadcast %cst_13 : f32 to vector<8x1xf32>
    %22 = arith.addf %18, %21 : vector<8x1xf32>
    %23 = math.rsqrt %22 : vector<8x1xf32>
    %24 = vector.broadcast %23 : vector<8x1xf32> to vector<8x32xf32>
    %25 = arith.mulf %20, %24 : vector<8x32xf32>
    %26 = vector.broadcast %6 : vector<1x32xf32> to vector<8x32xf32>
    %27 = arith.mulf %25, %26 : vector<8x32xf32>
    %28 = vector.broadcast %7 : vector<1x32xf32> to vector<8x32xf32>
    %29 = arith.addf %27, %28 : vector<8x32xf32>
    %30 = arith.truncf %29 : vector<8x32xf32> to vector<8x32xbf16>
    %c0_14 = arith.constant 0 : index
    %c0_15 = arith.constant 0 : index
    %31 = vector.load %arg7[%c0_14, %c0_15] : memref<32x96xbf16, #tpu.memory_space<vmem>>, vector<32x96xbf16>
    %cst_16 = arith.constant dense<0.000000e+00> : vector<8x96xf32>
    %32 = tpu.matmul %30, %31, %cst_16 {dimension_numbers = #tpu.dot_dimension_numbers<[1], [0], [0], [1], [0, 0, 1, 1], [], []>} : vector<8x32xbf16>, vector<32x96xbf16>, vector<8x96xf32> -> vector<8x96xf32>
    %33 = vector.extract_strided_slice %32 {offsets = [0, 0], sizes = [8, 32], strides = [1, 1]} : vector<8x96xf32> to vector<8x32xf32>
    %cst_17 = arith.constant 0.353553385 : f32
    %34 = vector.broadcast %cst_17 : f32 to vector<8x32xf32>
    %35 = arith.mulf %33, %34 : vector<8x32xf32>
    %36 = arith.truncf %35 : vector<8x32xf32> to vector<8x32xbf16>
    %37 = vector.extract_strided_slice %32 {offsets = [0, 32], sizes = [8, 32], strides = [1, 1]} : vector<8x96xf32> to vector<8x32xf32>
    %38 = arith.truncf %37 : vector<8x32xf32> to vector<8x32xbf16>
    %39 = vector.extract_strided_slice %32 {offsets = [0, 64], sizes = [8, 32], strides = [1, 1]} : vector<8x96xf32> to vector<8x32xf32>
    %40 = arith.truncf %39 : vector<8x32xf32> to vector<8x32xbf16>
    %c0_18 = arith.constant 0 : index
    %c0_19 = arith.constant 0 : index
    %41 = vector.load %arg8[%c0_18, %c0_19] : memref<32x32xbf16, #tpu.memory_space<vmem>>, vector<32x32xbf16>
    %cst_20 = arith.constant 0xFF800000 : f32
    %42 = vector.broadcast %cst_20 : f32 to vector<8x1xf32>
    %cst_21 = arith.constant 0xFF800000 : f32
    %43 = vector.broadcast %cst_21 : f32 to vector<8x1xf32>
    %cst_22 = arith.constant 0xFF800000 : f32
    %44 = vector.broadcast %cst_22 : f32 to vector<8x1xf32>
    %cst_23 = arith.constant 0xFF800000 : f32
    %45 = vector.broadcast %cst_23 : f32 to vector<8x1xf32>
    %cst_24 = arith.constant 0.000000e+00 : f32
    %46 = vector.broadcast %cst_24 : f32 to vector<8x1xf32>
    %cst_25 = arith.constant 0.000000e+00 : f32
    %47 = vector.broadcast %cst_25 : f32 to vector<8x1xf32>
    %cst_26 = arith.constant 0.000000e+00 : f32
    %48 = vector.broadcast %cst_26 : f32 to vector<8x1xf32>
    %cst_27 = arith.constant 0.000000e+00 : f32
    %49 = vector.broadcast %cst_27 : f32 to vector<8x1xf32>
    %cst_28 = arith.constant 0.000000e+00 : f32
    %50 = vector.broadcast %cst_28 : f32 to vector<8x8xf32>
    %cst_29 = arith.constant 0.000000e+00 : f32
    %51 = vector.broadcast %cst_29 : f32 to vector<8x8xf32>
    %cst_30 = arith.constant 0.000000e+00 : f32
    %52 = vector.broadcast %cst_30 : f32 to vector<8x8xf32>
    %cst_31 = arith.constant 0.000000e+00 : f32
    %53 = vector.broadcast %cst_31 : f32 to vector<8x8xf32>
    %54 = tpu.iota {dimensions = array<i32: 0>} : vector<8x8xi32>
    %55 = tpu.iota {dimensions = array<i32: 1>} : vector<8x8xi32>
    %c0_i32 = arith.constant 0 : i32
    %56 = vector.broadcast %c0_i32 : i32 to vector<8x8xi32>
    %57 = arith.addi %55, %56 : vector<8x8xi32>
    %58 = arith.cmpi sle, %57, %54 : vector<8x8xi32>
    %59 = arith.cmpi eq, %57, %54 : vector<8x8xi32>
    %cst_32 = arith.constant 1.000000e+00 : f32
    %60 = vector.broadcast %cst_32 : f32 to vector<8x8xf32>
    %61 = vector.shape_cast %3 : vector<1x8xf32> to vector<1x8xf32>
    %62 = vector.broadcast %61 : vector<1x8xf32> to vector<8x8xf32>
    %63 = arith.select %59, %60, %62 : vector<8x8xi1>, vector<8x8xf32>
    %cst_33 = arith.constant 0.000000e+00 : f32
    %64 = vector.broadcast %cst_33 : f32 to vector<8x8xf32>
    %65 = arith.select %58, %63, %64 : vector<8x8xi1>, vector<8x8xf32>
    %66 = vector.extract_strided_slice %36 {offsets = [0, 0], sizes = [8, 8], strides = [1, 1]} : vector<8x32xbf16> to vector<8x8xbf16>
    %67 = vector.extract_strided_slice %38 {offsets = [0, 0], sizes = [8, 8], strides = [1, 1]} : vector<8x32xbf16> to vector<8x8xbf16>
    %cst_34 = arith.constant dense<0.000000e+00> : vector<8x8xf32>
    %68 = tpu.matmul %66, %67, %cst_34 {dimension_numbers = #tpu.dot_dimension_numbers<[1], [1], [0], [0], [0, 0, 1, 0], [], []>} : vector<8x8xbf16>, vector<8x8xbf16>, vector<8x8xf32> -> vector<8x8xf32>
    %cst_35 = arith.constant dense<0xFF800000> : vector<8xf32>
    %69 = vector.multi_reduction <maximumf>, %68, %cst_35 [1] : vector<8x8xf32> to vector<8xf32>
    %70 = vector.shape_cast %69 : vector<8xf32> to vector<8x1xf32>
    %71 = arith.maximumf %42, %70 : vector<8x1xf32>
    %72 = arith.subf %42, %71 : vector<8x1xf32>
    %73 = math.exp %72 : vector<8x1xf32>
    %74 = vector.broadcast %71 : vector<8x1xf32> to vector<8x8xf32>
    %75 = arith.subf %68, %74 : vector<8x8xf32>
    %76 = math.exp %75 : vector<8x8xf32>
    %77 = arith.mulf %76, %65 : vector<8x8xf32>
    %78 = arith.mulf %73, %46 : vector<8x1xf32>
    %cst_36 = arith.constant dense<0.000000e+00> : vector<8xf32>
    %79 = vector.multi_reduction <add>, %77, %cst_36 [1] : vector<8x8xf32> to vector<8xf32>
    %80 = vector.shape_cast %79 : vector<8xf32> to vector<8x1xf32>
    %81 = arith.addf %78, %80 : vector<8x1xf32>
    %82 = vector.broadcast %73 : vector<8x1xf32> to vector<8x8xf32>
    %83 = arith.mulf %82, %50 : vector<8x8xf32>
    %84 = arith.truncf %77 : vector<8x8xf32> to vector<8x8xbf16>
    %85 = vector.extract_strided_slice %40 {offsets = [0, 0], sizes = [8, 8], strides = [1, 1]} : vector<8x32xbf16> to vector<8x8xbf16>
    %cst_37 = arith.constant dense<0.000000e+00> : vector<8x8xf32>
    %86 = tpu.matmul %84, %85, %cst_37 {dimension_numbers = #tpu.dot_dimension_numbers<[1], [0], [0], [1], [0, 0, 1, 1], [], []>} : vector<8x8xbf16>, vector<8x8xbf16>, vector<8x8xf32> -> vector<8x8xf32>
    %87 = arith.addf %83, %86 : vector<8x8xf32>
    %88 = vector.extract_strided_slice %36 {offsets = [0, 8], sizes = [8, 8], strides = [1, 1]} : vector<8x32xbf16> to vector<8x8xbf16>
    %89 = vector.extract_strided_slice %38 {offsets = [0, 8], sizes = [8, 8], strides = [1, 1]} : vector<8x32xbf16> to vector<8x8xbf16>
    %cst_38 = arith.constant dense<0.000000e+00> : vector<8x8xf32>
    %90 = tpu.matmul %88, %89, %cst_38 {dimension_numbers = #tpu.dot_dimension_numbers<[1], [1], [0], [0], [0, 0, 1, 0], [], []>} : vector<8x8xbf16>, vector<8x8xbf16>, vector<8x8xf32> -> vector<8x8xf32>
    %cst_39 = arith.constant dense<0xFF800000> : vector<8xf32>
    %91 = vector.multi_reduction <maximumf>, %90, %cst_39 [1] : vector<8x8xf32> to vector<8xf32>
    %92 = vector.shape_cast %91 : vector<8xf32> to vector<8x1xf32>
    %93 = arith.maximumf %43, %92 : vector<8x1xf32>
    %94 = arith.subf %43, %93 : vector<8x1xf32>
    %95 = math.exp %94 : vector<8x1xf32>
    %96 = vector.broadcast %93 : vector<8x1xf32> to vector<8x8xf32>
    %97 = arith.subf %90, %96 : vector<8x8xf32>
    %98 = math.exp %97 : vector<8x8xf32>
    %99 = arith.mulf %98, %65 : vector<8x8xf32>
    %100 = arith.mulf %95, %47 : vector<8x1xf32>
    %cst_40 = arith.constant dense<0.000000e+00> : vector<8xf32>
    %101 = vector.multi_reduction <add>, %99, %cst_40 [1] : vector<8x8xf32> to vector<8xf32>
    %102 = vector.shape_cast %101 : vector<8xf32> to vector<8x1xf32>
    %103 = arith.addf %100, %102 : vector<8x1xf32>
    %104 = vector.broadcast %95 : vector<8x1xf32> to vector<8x8xf32>
    %105 = arith.mulf %104, %51 : vector<8x8xf32>
    %106 = arith.truncf %99 : vector<8x8xf32> to vector<8x8xbf16>
    %107 = vector.extract_strided_slice %40 {offsets = [0, 8], sizes = [8, 8], strides = [1, 1]} : vector<8x32xbf16> to vector<8x8xbf16>
    %cst_41 = arith.constant dense<0.000000e+00> : vector<8x8xf32>
    %108 = tpu.matmul %106, %107, %cst_41 {dimension_numbers = #tpu.dot_dimension_numbers<[1], [0], [0], [1], [0, 0, 1, 1], [], []>} : vector<8x8xbf16>, vector<8x8xbf16>, vector<8x8xf32> -> vector<8x8xf32>
    %109 = arith.addf %105, %108 : vector<8x8xf32>
    %110 = vector.extract_strided_slice %36 {offsets = [0, 16], sizes = [8, 8], strides = [1, 1]} : vector<8x32xbf16> to vector<8x8xbf16>
    %111 = vector.extract_strided_slice %38 {offsets = [0, 16], sizes = [8, 8], strides = [1, 1]} : vector<8x32xbf16> to vector<8x8xbf16>
    %cst_42 = arith.constant dense<0.000000e+00> : vector<8x8xf32>
    %112 = tpu.matmul %110, %111, %cst_42 {dimension_numbers = #tpu.dot_dimension_numbers<[1], [1], [0], [0], [0, 0, 1, 0], [], []>} : vector<8x8xbf16>, vector<8x8xbf16>, vector<8x8xf32> -> vector<8x8xf32>
    %cst_43 = arith.constant dense<0xFF800000> : vector<8xf32>
    %113 = vector.multi_reduction <maximumf>, %112, %cst_43 [1] : vector<8x8xf32> to vector<8xf32>
    %114 = vector.shape_cast %113 : vector<8xf32> to vector<8x1xf32>
    %115 = arith.maximumf %44, %114 : vector<8x1xf32>
    %116 = arith.subf %44, %115 : vector<8x1xf32>
    %117 = math.exp %116 : vector<8x1xf32>
    %118 = vector.broadcast %115 : vector<8x1xf32> to vector<8x8xf32>
    %119 = arith.subf %112, %118 : vector<8x8xf32>
    %120 = math.exp %119 : vector<8x8xf32>
    %121 = arith.mulf %120, %65 : vector<8x8xf32>
    %122 = arith.mulf %117, %48 : vector<8x1xf32>
    %cst_44 = arith.constant dense<0.000000e+00> : vector<8xf32>
    %123 = vector.multi_reduction <add>, %121, %cst_44 [1] : vector<8x8xf32> to vector<8xf32>
    %124 = vector.shape_cast %123 : vector<8xf32> to vector<8x1xf32>
    %125 = arith.addf %122, %124 : vector<8x1xf32>
    %126 = vector.broadcast %117 : vector<8x1xf32> to vector<8x8xf32>
    %127 = arith.mulf %126, %52 : vector<8x8xf32>
    %128 = arith.truncf %121 : vector<8x8xf32> to vector<8x8xbf16>
    %129 = vector.extract_strided_slice %40 {offsets = [0, 16], sizes = [8, 8], strides = [1, 1]} : vector<8x32xbf16> to vector<8x8xbf16>
    %cst_45 = arith.constant dense<0.000000e+00> : vector<8x8xf32>
    %130 = tpu.matmul %128, %129, %cst_45 {dimension_numbers = #tpu.dot_dimension_numbers<[1], [0], [0], [1], [0, 0, 1, 1], [], []>} : vector<8x8xbf16>, vector<8x8xbf16>, vector<8x8xf32> -> vector<8x8xf32>
    %131 = arith.addf %127, %130 : vector<8x8xf32>
    %132 = vector.extract_strided_slice %36 {offsets = [0, 24], sizes = [8, 8], strides = [1, 1]} : vector<8x32xbf16> to vector<8x8xbf16>
    %133 = vector.extract_strided_slice %38 {offsets = [0, 24], sizes = [8, 8], strides = [1, 1]} : vector<8x32xbf16> to vector<8x8xbf16>
    %cst_46 = arith.constant dense<0.000000e+00> : vector<8x8xf32>
    %134 = tpu.matmul %132, %133, %cst_46 {dimension_numbers = #tpu.dot_dimension_numbers<[1], [1], [0], [0], [0, 0, 1, 0], [], []>} : vector<8x8xbf16>, vector<8x8xbf16>, vector<8x8xf32> -> vector<8x8xf32>
    %cst_47 = arith.constant dense<0xFF800000> : vector<8xf32>
    %135 = vector.multi_reduction <maximumf>, %134, %cst_47 [1] : vector<8x8xf32> to vector<8xf32>
    %136 = vector.shape_cast %135 : vector<8xf32> to vector<8x1xf32>
    %137 = arith.maximumf %45, %136 : vector<8x1xf32>
    %138 = arith.subf %45, %137 : vector<8x1xf32>
    %139 = math.exp %138 : vector<8x1xf32>
    %140 = vector.broadcast %137 : vector<8x1xf32> to vector<8x8xf32>
    %141 = arith.subf %134, %140 : vector<8x8xf32>
    %142 = math.exp %141 : vector<8x8xf32>
    %143 = arith.mulf %142, %65 : vector<8x8xf32>
    %144 = arith.mulf %139, %49 : vector<8x1xf32>
    %cst_48 = arith.constant dense<0.000000e+00> : vector<8xf32>
    %145 = vector.multi_reduction <add>, %143, %cst_48 [1] : vector<8x8xf32> to vector<8xf32>
    %146 = vector.shape_cast %145 : vector<8xf32> to vector<8x1xf32>
    %147 = arith.addf %144, %146 : vector<8x1xf32>
    %148 = vector.broadcast %139 : vector<8x1xf32> to vector<8x8xf32>
    %149 = arith.mulf %148, %53 : vector<8x8xf32>
    %150 = arith.truncf %143 : vector<8x8xf32> to vector<8x8xbf16>
    %151 = vector.extract_strided_slice %40 {offsets = [0, 24], sizes = [8, 8], strides = [1, 1]} : vector<8x32xbf16> to vector<8x8xbf16>
    %cst_49 = arith.constant dense<0.000000e+00> : vector<8x8xf32>
    %152 = tpu.matmul %150, %151, %cst_49 {dimension_numbers = #tpu.dot_dimension_numbers<[1], [0], [0], [1], [0, 0, 1, 1], [], []>} : vector<8x8xbf16>, vector<8x8xbf16>, vector<8x8xf32> -> vector<8x8xf32>
    %153 = arith.addf %149, %152 : vector<8x8xf32>
    %154 = arith.extf %40 : vector<8x32xbf16> to vector<8x32xf32>
    %cst_50 = arith.constant dense<0.000000e+00> : vector<32xf32>
    %155 = vector.multi_reduction <add>, %154, %cst_50 [0] : vector<8x32xf32> to vector<32xf32>
    %156 = vector.shape_cast %155 : vector<32xf32> to vector<1x32xf32>
    %cst_51 = arith.constant 9.99999997E-7 : f32
    %157 = vector.broadcast %cst_51 : f32 to vector<8x1xf32>
    %158 = arith.addf %81, %157 : vector<8x1xf32>
    %159 = tpu.reciprocal %158 {approx = true} : vector<8x1xf32> -> vector<8x1xf32>
    %160 = vector.extract_strided_slice %156 {offsets = [0, 0], sizes = [1, 8], strides = [1, 1]} : vector<1x32xf32> to vector<1x8xf32>
    %cst_52 = arith.constant 1.250000e-07 : f32
    %161 = vector.broadcast %cst_52 : f32 to vector<1x8xf32>
    %162 = arith.mulf %161, %160 : vector<1x8xf32>
    %163 = vector.broadcast %162 : vector<1x8xf32> to vector<8x8xf32>
    %164 = arith.addf %87, %163 : vector<8x8xf32>
    %165 = vector.broadcast %159 : vector<8x1xf32> to vector<8x8xf32>
    %166 = arith.mulf %164, %165 : vector<8x8xf32>
    %c0_53 = arith.constant 0 : index
    %c0_54 = arith.constant 0 : index
    %167 = vector.load %arg24[%c0_53, %c0_54] : memref<8x32xf32, #tpu.memory_space<vmem>>, vector<8x8xf32>
    tpu.vector_store %arg24[%c0_53, %c0_54], %166 {strides = array<i32>} : memref<8x32xf32, #tpu.memory_space<vmem>>, vector<8x8xf32>,
    %cst_55 = arith.constant 9.99999997E-7 : f32
    %168 = vector.broadcast %cst_55 : f32 to vector<8x1xf32>
    %169 = arith.addf %103, %168 : vector<8x1xf32>
    %170 = tpu.reciprocal %169 {approx = true} : vector<8x1xf32> -> vector<8x1xf32>
    %171 = vector.extract_strided_slice %156 {offsets = [0, 8], sizes = [1, 8], strides = [1, 1]} : vector<1x32xf32> to vector<1x8xf32>
    %cst_56 = arith.constant 1.250000e-07 : f32
    %172 = vector.broadcast %cst_56 : f32 to vector<1x8xf32>
    %173 = arith.mulf %172, %171 : vector<1x8xf32>
    %174 = vector.broadcast %173 : vector<1x8xf32> to vector<8x8xf32>
    %175 = arith.addf %109, %174 : vector<8x8xf32>
    %176 = vector.broadcast %170 : vector<8x1xf32> to vector<8x8xf32>
    %177 = arith.mulf %175, %176 : vector<8x8xf32>
    %c0_57 = arith.constant 0 : index
    %c8 = arith.constant 8 : index
    %178 = vector.load %arg24[%c0_57, %c8] : memref<8x32xf32, #tpu.memory_space<vmem>>, vector<8x8xf32>
    tpu.vector_store %arg24[%c0_57, %c8], %177 {strides = array<i32>} : memref<8x32xf32, #tpu.memory_space<vmem>>, vector<8x8xf32>,
    %cst_58 = arith.constant 9.99999997E-7 : f32
    %179 = vector.broadcast %cst_58 : f32 to vector<8x1xf32>
    %180 = arith.addf %125, %179 : vector<8x1xf32>
    %181 = tpu.reciprocal %180 {approx = true} : vector<8x1xf32> -> vector<8x1xf32>
    %182 = vector.extract_strided_slice %156 {offsets = [0, 16], sizes = [1, 8], strides = [1, 1]} : vector<1x32xf32> to vector<1x8xf32>
    %cst_59 = arith.constant 1.250000e-07 : f32
    %183 = vector.broadcast %cst_59 : f32 to vector<1x8xf32>
    %184 = arith.mulf %183, %182 : vector<1x8xf32>
    %185 = vector.broadcast %184 : vector<1x8xf32> to vector<8x8xf32>
    %186 = arith.addf %131, %185 : vector<8x8xf32>
    %187 = vector.broadcast %181 : vector<8x1xf32> to vector<8x8xf32>
    %188 = arith.mulf %186, %187 : vector<8x8xf32>
    %c0_60 = arith.constant 0 : index
    %c16 = arith.constant 16 : index
    %189 = vector.load %arg24[%c0_60, %c16] : memref<8x32xf32, #tpu.memory_space<vmem>>, vector<8x8xf32>
    tpu.vector_store %arg24[%c0_60, %c16], %188 {strides = array<i32>} : memref<8x32xf32, #tpu.memory_space<vmem>>, vector<8x8xf32>,
    %cst_61 = arith.constant 9.99999997E-7 : f32
    %190 = vector.broadcast %cst_61 : f32 to vector<8x1xf32>
    %191 = arith.addf %147, %190 : vector<8x1xf32>
    %192 = tpu.reciprocal %191 {approx = true} : vector<8x1xf32> -> vector<8x1xf32>
    %193 = vector.extract_strided_slice %156 {offsets = [0, 24], sizes = [1, 8], strides = [1, 1]} : vector<1x32xf32> to vector<1x8xf32>
    %cst_62 = arith.constant 1.250000e-07 : f32
    %194 = vector.broadcast %cst_62 : f32 to vector<1x8xf32>
    %195 = arith.mulf %194, %193 : vector<1x8xf32>
    %196 = vector.broadcast %195 : vector<1x8xf32> to vector<8x8xf32>
    %197 = arith.addf %153, %196 : vector<8x8xf32>
    %198 = vector.broadcast %192 : vector<8x1xf32> to vector<8x8xf32>
    %199 = arith.mulf %197, %198 : vector<8x8xf32>
    %c0_63 = arith.constant 0 : index
    %c24 = arith.constant 24 : index
    %200 = vector.load %arg24[%c0_63, %c24] : memref<8x32xf32, #tpu.memory_space<vmem>>, vector<8x8xf32>
    tpu.vector_store %arg24[%c0_63, %c24], %199 {strides = array<i32>} : memref<8x32xf32, #tpu.memory_space<vmem>>, vector<8x8xf32>,
    %c0_64 = arith.constant 0 : index
    %c0_65 = arith.constant 0 : index
    %201 = vector.load %arg24[%c0_64, %c0_65] : memref<8x32xf32, #tpu.memory_space<vmem>>, vector<8x32xf32>
    %202 = arith.truncf %201 : vector<8x32xf32> to vector<8x32xbf16>
    %cst_66 = arith.constant dense<0.000000e+00> : vector<8x32xf32>
    %203 = tpu.matmul %202, %41, %cst_66 {dimension_numbers = #tpu.dot_dimension_numbers<[1], [0], [0], [1], [0, 0, 1, 1], [], []>} : vector<8x32xbf16>, vector<32x32xbf16>, vector<8x32xf32> -> vector<8x32xf32>
    %204 = arith.addf %1, %203 : vector<8x32xf32>
    %c0_67 = arith.constant 0 : index
    %c0_68 = arith.constant 0 : index
    %205 = vector.load %arg9[%c0_67, %c0_68] : memref<1x32xf32, #tpu.memory_space<vmem>>, vector<1x32xf32>
    %c0_69 = arith.constant 0 : index
    %c0_70 = arith.constant 0 : index
    %206 = vector.load %arg10[%c0_69, %c0_70] : memref<1x32xf32, #tpu.memory_space<vmem>>, vector<1x32xf32>
    %cst_71 = arith.constant dense<0.000000e+00> : vector<8xf32>
    %207 = vector.multi_reduction <add>, %204, %cst_71 [1] : vector<8x32xf32> to vector<8xf32>
    %208 = vector.shape_cast %207 : vector<8xf32> to vector<8x1xf32>
    %cst_72 = arith.constant 3.200000e+01 : f32
    %209 = vector.broadcast %cst_72 : f32 to vector<8x1xf32>
    %210 = arith.divf %208, %209 : vector<8x1xf32>
    %211 = vector.broadcast %210 : vector<8x1xf32> to vector<8x32xf32>
    %212 = arith.subf %204, %211 : vector<8x32xf32>
    %213 = arith.mulf %212, %212 : vector<8x32xf32>
    %cst_73 = arith.constant dense<0.000000e+00> : vector<8xf32>
    %214 = vector.multi_reduction <add>, %213, %cst_73 [1] : vector<8x32xf32> to vector<8xf32>
    %215 = vector.shape_cast %214 : vector<8xf32> to vector<8x1xf32>
    %cst_74 = arith.constant 3.200000e+01 : f32
    %216 = vector.broadcast %cst_74 : f32 to vector<8x1xf32>
    %217 = arith.divf %215, %216 : vector<8x1xf32>
    %218 = vector.broadcast %210 : vector<8x1xf32> to vector<8x32xf32>
    %219 = arith.subf %204, %218 : vector<8x32xf32>
    %cst_75 = arith.constant 9.99999974E-6 : f32
    %220 = vector.broadcast %cst_75 : f32 to vector<8x1xf32>
    %221 = arith.addf %217, %220 : vector<8x1xf32>
    %222 = math.rsqrt %221 : vector<8x1xf32>
    %223 = vector.broadcast %222 : vector<8x1xf32> to vector<8x32xf32>
    %224 = arith.mulf %219, %223 : vector<8x32xf32>
    %225 = vector.broadcast %205 : vector<1x32xf32> to vector<8x32xf32>
    %226 = arith.mulf %224, %225 : vector<8x32xf32>
    %227 = vector.broadcast %206 : vector<1x32xf32> to vector<8x32xf32>
    %228 = arith.addf %226, %227 : vector<8x32xf32>
    %229 = arith.truncf %228 : vector<8x32xf32> to vector<8x32xbf16>
    %c0_76 = arith.constant 0 : index
    %c0_77 = arith.constant 0 : index
    %230 = vector.load %arg11[%c0_76, %c0_77] : memref<32x32xbf16, #tpu.memory_space<vmem>>, vector<32x32xbf16>
    %cst_78 = arith.constant dense<0.000000e+00> : vector<8x32xf32>
    %231 = tpu.matmul %229, %230, %cst_78 {dimension_numbers = #tpu.dot_dimension_numbers<[1], [0], [0], [1], [0, 0, 1, 1], [], []>} : vector<8x32xbf16>, vector<32x32xbf16>, vector<8x32xf32> -> vector<8x32xf32>
    %cst_79 = arith.constant 0.353553385 : f32
    %232 = vector.broadcast %cst_79 : f32 to vector<8x32xf32>
    %233 = arith.mulf %231, %232 : vector<8x32xf32>
    %234 = arith.truncf %233 : vector<8x32xf32> to vector<8x32xbf16>
    %c0_80 = arith.constant 0 : index
    %c0_81 = arith.constant 0 : index
    %c0_82 = arith.constant 0 : index
    %235 = vector.load %arg2[%c0_80, %c0_81, %c0_82] : memref<1x8x32xf32, #tpu.memory_space<vmem>>, vector<1x8x32xf32>
    %236 = vector.shape_cast %235 : vector<1x8x32xf32> to vector<8x32xf32>
    %c0_83 = arith.constant 0 : index
    %c0_84 = arith.constant 0 : index
    %237 = vector.load %arg3[%c0_83, %c0_84] : memref<1x32xf32, #tpu.memory_space<vmem>>, vector<1x32xf32>
    %c0_85 = arith.constant 0 : index
    %c0_86 = arith.constant 0 : index
    %238 = vector.load %arg4[%c0_85, %c0_86] : memref<1x32xf32, #tpu.memory_space<vmem>>, vector<1x32xf32>
    %cst_87 = arith.constant dense<0.000000e+00> : vector<8xf32>
    %239 = vector.multi_reduction <add>, %236, %cst_87 [1] : vector<8x32xf32> to vector<8xf32>
    %240 = vector.shape_cast %239 : vector<8xf32> to vector<8x1xf32>
    %cst_88 = arith.constant 3.200000e+01 : f32
    %241 = vector.broadcast %cst_88 : f32 to vector<8x1xf32>
    %242 = arith.divf %240, %241 : vector<8x1xf32>
    %243 = vector.broadcast %242 : vector<8x1xf32> to vector<8x32xf32>
    %244 = arith.subf %236, %243 : vector<8x32xf32>
    %245 = arith.mulf %244, %244 : vector<8x32xf32>
    %cst_89 = arith.constant dense<0.000000e+00> : vector<8xf32>
    %246 = vector.multi_reduction <add>, %245, %cst_89 [1] : vector<8x32xf32> to vector<8xf32>
    %247 = vector.shape_cast %246 : vector<8xf32> to vector<8x1xf32>
    %cst_90 = arith.constant 3.200000e+01 : f32
    %248 = vector.broadcast %cst_90 : f32 to vector<8x1xf32>
    %249 = arith.divf %247, %248 : vector<8x1xf32>
    %250 = vector.broadcast %242 : vector<8x1xf32> to vector<8x32xf32>
    %251 = arith.subf %236, %250 : vector<8x32xf32>
    %cst_91 = arith.constant 9.99999974E-6 : f32
    %252 = vector.broadcast %cst_91 : f32 to vector<8x1xf32>
    %253 = arith.addf %249, %252 : vector<8x1xf32>
    %254 = math.rsqrt %253 : vector<8x1xf32>
    %255 = vector.broadcast %254 : vector<8x1xf32> to vector<8x32xf32>
    %256 = arith.mulf %251, %255 : vector<8x32xf32>
    %257 = vector.broadcast %237 : vector<1x32xf32> to vector<8x32xf32>
    %258 = arith.mulf %256, %257 : vector<8x32xf32>
    %259 = vector.broadcast %238 : vector<1x32xf32> to vector<8x32xf32>
    %260 = arith.addf %258, %259 : vector<8x32xf32>
    %261 = arith.truncf %260 : vector<8x32xf32> to vector<8x32xbf16>
    %c0_92 = arith.constant 0 : index
    %c0_93 = arith.constant 0 : index
    %262 = vector.load %arg12[%c0_92, %c0_93] : memref<32x32xbf16, #tpu.memory_space<vmem>>, vector<32x32xbf16>
    %cst_94 = arith.constant dense<0.000000e+00> : vector<8x32xf32>
    %263 = tpu.matmul %261, %262, %cst_94 {dimension_numbers = #tpu.dot_dimension_numbers<[1], [0], [0], [1], [0, 0, 1, 1], [], []>} : vector<8x32xbf16>, vector<32x32xbf16>, vector<8x32xf32> -> vector<8x32xf32>
    %264 = arith.truncf %263 : vector<8x32xf32> to vector<8x32xbf16>
    %c0_95 = arith.constant 0 : index
    %c0_96 = arith.constant 0 : index
    %265 = vector.load %arg13[%c0_95, %c0_96] : memref<32x32xbf16, #tpu.memory_space<vmem>>, vector<32x32xbf16>
    %cst_97 = arith.constant dense<0.000000e+00> : vector<8x32xf32>
    %266 = tpu.matmul %261, %265, %cst_97 {dimension_numbers = #tpu.dot_dimension_numbers<[1], [0], [0], [1], [0, 0, 1, 1], [], []>} : vector<8x32xbf16>, vector<32x32xbf16>, vector<8x32xf32> -> vector<8x32xf32>
    %267 = arith.truncf %266 : vector<8x32xf32> to vector<8x32xbf16>
    %c0_98 = arith.constant 0 : index
    %c0_99 = arith.constant 0 : index
    %268 = vector.load %arg14[%c0_98, %c0_99] : memref<32x32xbf16, #tpu.memory_space<vmem>>, vector<32x32xbf16>
    %cst_100 = arith.constant 0xFF800000 : f32
    %269 = vector.broadcast %cst_100 : f32 to vector<8x1xf32>
    %cst_101 = arith.constant 0xFF800000 : f32
    %270 = vector.broadcast %cst_101 : f32 to vector<8x1xf32>
    %cst_102 = arith.constant 0xFF800000 : f32
    %271 = vector.broadcast %cst_102 : f32 to vector<8x1xf32>
    %cst_103 = arith.constant 0xFF800000 : f32
    %272 = vector.broadcast %cst_103 : f32 to vector<8x1xf32>
    %cst_104 = arith.constant 0.000000e+00 : f32
    %273 = vector.broadcast %cst_104 : f32 to vector<8x1xf32>
    %cst_105 = arith.constant 0.000000e+00 : f32
    %274 = vector.broadcast %cst_105 : f32 to vector<8x1xf32>
    %cst_106 = arith.constant 0.000000e+00 : f32
    %275 = vector.broadcast %cst_106 : f32 to vector<8x1xf32>
    %cst_107 = arith.constant 0.000000e+00 : f32
    %276 = vector.broadcast %cst_107 : f32 to vector<8x1xf32>
    %cst_108 = arith.constant 0.000000e+00 : f32
    %277 = vector.broadcast %cst_108 : f32 to vector<8x8xf32>
    %cst_109 = arith.constant 0.000000e+00 : f32
    %278 = vector.broadcast %cst_109 : f32 to vector<8x8xf32>
    %cst_110 = arith.constant 0.000000e+00 : f32
    %279 = vector.broadcast %cst_110 : f32 to vector<8x8xf32>
    %cst_111 = arith.constant 0.000000e+00 : f32
    %280 = vector.broadcast %cst_111 : f32 to vector<8x8xf32>
    %281 = vector.shape_cast %5 : vector<1x8xf32> to vector<1x8xf32>
    %282 = vector.broadcast %281 : vector<1x8xf32> to vector<8x8xf32>
    %283 = vector.extract_strided_slice %234 {offsets = [0, 0], sizes = [8, 8], strides = [1, 1]} : vector<8x32xbf16> to vector<8x8xbf16>
    %284 = vector.extract_strided_slice %264 {offsets = [0, 0], sizes = [8, 8], strides = [1, 1]} : vector<8x32xbf16> to vector<8x8xbf16>
    %cst_112 = arith.constant dense<0.000000e+00> : vector<8x8xf32>
    %285 = tpu.matmul %283, %284, %cst_112 {dimension_numbers = #tpu.dot_dimension_numbers<[1], [1], [0], [0], [0, 0, 1, 0], [], []>} : vector<8x8xbf16>, vector<8x8xbf16>, vector<8x8xf32> -> vector<8x8xf32>
    %cst_113 = arith.constant dense<0xFF800000> : vector<8xf32>
    %286 = vector.multi_reduction <maximumf>, %285, %cst_113 [1] : vector<8x8xf32> to vector<8xf32>
    %287 = vector.shape_cast %286 : vector<8xf32> to vector<8x1xf32>
    %288 = arith.maximumf %269, %287 : vector<8x1xf32>
    %289 = arith.subf %269, %288 : vector<8x1xf32>
    %290 = math.exp %289 : vector<8x1xf32>
    %291 = vector.broadcast %288 : vector<8x1xf32> to vector<8x8xf32>
    %292 = arith.subf %285, %291 : vector<8x8xf32>
    %293 = math.exp %292 : vector<8x8xf32>
    %294 = arith.mulf %293, %282 : vector<8x8xf32>
    %295 = arith.mulf %290, %273 : vector<8x1xf32>
    %cst_114 = arith.constant dense<0.000000e+00> : vector<8xf32>
    %296 = vector.multi_reduction <add>, %294, %cst_114 [1] : vector<8x8xf32> to vector<8xf32>
    %297 = vector.shape_cast %296 : vector<8xf32> to vector<8x1xf32>
    %298 = arith.addf %295, %297 : vector<8x1xf32>
    %299 = vector.broadcast %290 : vector<8x1xf32> to vector<8x8xf32>
    %300 = arith.mulf %299, %277 : vector<8x8xf32>
    %301 = arith.truncf %294 : vector<8x8xf32> to vector<8x8xbf16>
    %302 = vector.extract_strided_slice %267 {offsets = [0, 0], sizes = [8, 8], strides = [1, 1]} : vector<8x32xbf16> to vector<8x8xbf16>
    %cst_115 = arith.constant dense<0.000000e+00> : vector<8x8xf32>
    %303 = tpu.matmul %301, %302, %cst_115 {dimension_numbers = #tpu.dot_dimension_numbers<[1], [0], [0], [1], [0, 0, 1, 1], [], []>} : vector<8x8xbf16>, vector<8x8xbf16>, vector<8x8xf32> -> vector<8x8xf32>
    %304 = arith.addf %300, %303 : vector<8x8xf32>
    %305 = vector.extract_strided_slice %234 {offsets = [0, 8], sizes = [8, 8], strides = [1, 1]} : vector<8x32xbf16> to vector<8x8xbf16>
    %306 = vector.extract_strided_slice %264 {offsets = [0, 8], sizes = [8, 8], strides = [1, 1]} : vector<8x32xbf16> to vector<8x8xbf16>
    %cst_116 = arith.constant dense<0.000000e+00> : vector<8x8xf32>
    %307 = tpu.matmul %305, %306, %cst_116 {dimension_numbers = #tpu.dot_dimension_numbers<[1], [1], [0], [0], [0, 0, 1, 0], [], []>} : vector<8x8xbf16>, vector<8x8xbf16>, vector<8x8xf32> -> vector<8x8xf32>
    %cst_117 = arith.constant dense<0xFF800000> : vector<8xf32>
    %308 = vector.multi_reduction <maximumf>, %307, %cst_117 [1] : vector<8x8xf32> to vector<8xf32>
    %309 = vector.shape_cast %308 : vector<8xf32> to vector<8x1xf32>
    %310 = arith.maximumf %270, %309 : vector<8x1xf32>
    %311 = arith.subf %270, %310 : vector<8x1xf32>
    %312 = math.exp %311 : vector<8x1xf32>
    %313 = vector.broadcast %310 : vector<8x1xf32> to vector<8x8xf32>
    %314 = arith.subf %307, %313 : vector<8x8xf32>
    %315 = math.exp %314 : vector<8x8xf32>
    %316 = arith.mulf %315, %282 : vector<8x8xf32>
    %317 = arith.mulf %312, %274 : vector<8x1xf32>
    %cst_118 = arith.constant dense<0.000000e+00> : vector<8xf32>
    %318 = vector.multi_reduction <add>, %316, %cst_118 [1] : vector<8x8xf32> to vector<8xf32>
    %319 = vector.shape_cast %318 : vector<8xf32> to vector<8x1xf32>
    %320 = arith.addf %317, %319 : vector<8x1xf32>
    %321 = vector.broadcast %312 : vector<8x1xf32> to vector<8x8xf32>
    %322 = arith.mulf %321, %278 : vector<8x8xf32>
    %323 = arith.truncf %316 : vector<8x8xf32> to vector<8x8xbf16>
    %324 = vector.extract_strided_slice %267 {offsets = [0, 8], sizes = [8, 8], strides = [1, 1]} : vector<8x32xbf16> to vector<8x8xbf16>
    %cst_119 = arith.constant dense<0.000000e+00> : vector<8x8xf32>
    %325 = tpu.matmul %323, %324, %cst_119 {dimension_numbers = #tpu.dot_dimension_numbers<[1], [0], [0], [1], [0, 0, 1, 1], [], []>} : vector<8x8xbf16>, vector<8x8xbf16>, vector<8x8xf32> -> vector<8x8xf32>
    %326 = arith.addf %322, %325 : vector<8x8xf32>
    %327 = vector.extract_strided_slice %234 {offsets = [0, 16], sizes = [8, 8], strides = [1, 1]} : vector<8x32xbf16> to vector<8x8xbf16>
    %328 = vector.extract_strided_slice %264 {offsets = [0, 16], sizes = [8, 8], strides = [1, 1]} : vector<8x32xbf16> to vector<8x8xbf16>
    %cst_120 = arith.constant dense<0.000000e+00> : vector<8x8xf32>
    %329 = tpu.matmul %327, %328, %cst_120 {dimension_numbers = #tpu.dot_dimension_numbers<[1], [1], [0], [0], [0, 0, 1, 0], [], []>} : vector<8x8xbf16>, vector<8x8xbf16>, vector<8x8xf32> -> vector<8x8xf32>
    %cst_121 = arith.constant dense<0xFF800000> : vector<8xf32>
    %330 = vector.multi_reduction <maximumf>, %329, %cst_121 [1] : vector<8x8xf32> to vector<8xf32>
    %331 = vector.shape_cast %330 : vector<8xf32> to vector<8x1xf32>
    %332 = arith.maximumf %271, %331 : vector<8x1xf32>
    %333 = arith.subf %271, %332 : vector<8x1xf32>
    %334 = math.exp %333 : vector<8x1xf32>
    %335 = vector.broadcast %332 : vector<8x1xf32> to vector<8x8xf32>
    %336 = arith.subf %329, %335 : vector<8x8xf32>
    %337 = math.exp %336 : vector<8x8xf32>
    %338 = arith.mulf %337, %282 : vector<8x8xf32>
    %339 = arith.mulf %334, %275 : vector<8x1xf32>
    %cst_122 = arith.constant dense<0.000000e+00> : vector<8xf32>
    %340 = vector.multi_reduction <add>, %338, %cst_122 [1] : vector<8x8xf32> to vector<8xf32>
    %341 = vector.shape_cast %340 : vector<8xf32> to vector<8x1xf32>
    %342 = arith.addf %339, %341 : vector<8x1xf32>
    %343 = vector.broadcast %334 : vector<8x1xf32> to vector<8x8xf32>
    %344 = arith.mulf %343, %279 : vector<8x8xf32>
    %345 = arith.truncf %338 : vector<8x8xf32> to vector<8x8xbf16>
    %346 = vector.extract_strided_slice %267 {offsets = [0, 16], sizes = [8, 8], strides = [1, 1]} : vector<8x32xbf16> to vector<8x8xbf16>
    %cst_123 = arith.constant dense<0.000000e+00> : vector<8x8xf32>
    %347 = tpu.matmul %345, %346, %cst_123 {dimension_numbers = #tpu.dot_dimension_numbers<[1], [0], [0], [1], [0, 0, 1, 1], [], []>} : vector<8x8xbf16>, vector<8x8xbf16>, vector<8x8xf32> -> vector<8x8xf32>
    %348 = arith.addf %344, %347 : vector<8x8xf32>
    %349 = vector.extract_strided_slice %234 {offsets = [0, 24], sizes = [8, 8], strides = [1, 1]} : vector<8x32xbf16> to vector<8x8xbf16>
    %350 = vector.extract_strided_slice %264 {offsets = [0, 24], sizes = [8, 8], strides = [1, 1]} : vector<8x32xbf16> to vector<8x8xbf16>
    %cst_124 = arith.constant dense<0.000000e+00> : vector<8x8xf32>
    %351 = tpu.matmul %349, %350, %cst_124 {dimension_numbers = #tpu.dot_dimension_numbers<[1], [1], [0], [0], [0, 0, 1, 0], [], []>} : vector<8x8xbf16>, vector<8x8xbf16>, vector<8x8xf32> -> vector<8x8xf32>
    %cst_125 = arith.constant dense<0xFF800000> : vector<8xf32>
    %352 = vector.multi_reduction <maximumf>, %351, %cst_125 [1] : vector<8x8xf32> to vector<8xf32>
    %353 = vector.shape_cast %352 : vector<8xf32> to vector<8x1xf32>
    %354 = arith.maximumf %272, %353 : vector<8x1xf32>
    %355 = arith.subf %272, %354 : vector<8x1xf32>
    %356 = math.exp %355 : vector<8x1xf32>
    %357 = vector.broadcast %354 : vector<8x1xf32> to vector<8x8xf32>
    %358 = arith.subf %351, %357 : vector<8x8xf32>
    %359 = math.exp %358 : vector<8x8xf32>
    %360 = arith.mulf %359, %282 : vector<8x8xf32>
    %361 = arith.mulf %356, %276 : vector<8x1xf32>
    %cst_126 = arith.constant dense<0.000000e+00> : vector<8xf32>
    %362 = vector.multi_reduction <add>, %360, %cst_126 [1] : vector<8x8xf32> to vector<8xf32>
    %363 = vector.shape_cast %362 : vector<8xf32> to vector<8x1xf32>
    %364 = arith.addf %361, %363 : vector<8x1xf32>
    %365 = vector.broadcast %356 : vector<8x1xf32> to vector<8x8xf32>
    %366 = arith.mulf %365, %280 : vector<8x8xf32>
    %367 = arith.truncf %360 : vector<8x8xf32> to vector<8x8xbf16>
    %368 = vector.extract_strided_slice %267 {offsets = [0, 24], sizes = [8, 8], strides = [1, 1]} : vector<8x32xbf16> to vector<8x8xbf16>
    %cst_127 = arith.constant dense<0.000000e+00> : vector<8x8xf32>
    %369 = tpu.matmul %367, %368, %cst_127 {dimension_numbers = #tpu.dot_dimension_numbers<[1], [0], [0], [1], [0, 0, 1, 1], [], []>} : vector<8x8xbf16>, vector<8x8xbf16>, vector<8x8xf32> -> vector<8x8xf32>
    %370 = arith.addf %366, %369 : vector<8x8xf32>
    %371 = arith.extf %267 : vector<8x32xbf16> to vector<8x32xf32>
    %cst_128 = arith.constant dense<0.000000e+00> : vector<32xf32>
    %372 = vector.multi_reduction <add>, %371, %cst_128 [0] : vector<8x32xf32> to vector<32xf32>
    %373 = vector.shape_cast %372 : vector<32xf32> to vector<1x32xf32>
    %cst_129 = arith.constant 9.99999997E-7 : f32
    %374 = vector.broadcast %cst_129 : f32 to vector<8x1xf32>
    %375 = arith.addf %298, %374 : vector<8x1xf32>
    %376 = tpu.reciprocal %375 {approx = true} : vector<8x1xf32> -> vector<8x1xf32>
    %377 = vector.extract_strided_slice %373 {offsets = [0, 0], sizes = [1, 8], strides = [1, 1]} : vector<1x32xf32> to vector<1x8xf32>
    %cst_130 = arith.constant 1.250000e-07 : f32
    %378 = vector.broadcast %cst_130 : f32 to vector<1x8xf32>
    %379 = arith.mulf %378, %377 : vector<1x8xf32>
    %380 = vector.broadcast %379 : vector<1x8xf32> to vector<8x8xf32>
    %381 = arith.addf %304, %380 : vector<8x8xf32>
    %382 = vector.broadcast %376 : vector<8x1xf32> to vector<8x8xf32>
    %383 = arith.mulf %381, %382 : vector<8x8xf32>
    %c0_131 = arith.constant 0 : index
    %c0_132 = arith.constant 0 : index
    %384 = vector.load %arg24[%c0_131, %c0_132] : memref<8x32xf32, #tpu.memory_space<vmem>>, vector<8x8xf32>
    tpu.vector_store %arg24[%c0_131, %c0_132], %383 {strides = array<i32>} : memref<8x32xf32, #tpu.memory_space<vmem>>, vector<8x8xf32>,
    %cst_133 = arith.constant 9.99999997E-7 : f32
    %385 = vector.broadcast %cst_133 : f32 to vector<8x1xf32>
    %386 = arith.addf %320, %385 : vector<8x1xf32>
    %387 = tpu.reciprocal %386 {approx = true} : vector<8x1xf32> -> vector<8x1xf32>
    %388 = vector.extract_strided_slice %373 {offsets = [0, 8], sizes = [1, 8], strides = [1, 1]} : vector<1x32xf32> to vector<1x8xf32>
    %cst_134 = arith.constant 1.250000e-07 : f32
    %389 = vector.broadcast %cst_134 : f32 to vector<1x8xf32>
    %390 = arith.mulf %389, %388 : vector<1x8xf32>
    %391 = vector.broadcast %390 : vector<1x8xf32> to vector<8x8xf32>
    %392 = arith.addf %326, %391 : vector<8x8xf32>
    %393 = vector.broadcast %387 : vector<8x1xf32> to vector<8x8xf32>
    %394 = arith.mulf %392, %393 : vector<8x8xf32>
    %c0_135 = arith.constant 0 : index
    %c8_136 = arith.constant 8 : index
    %395 = vector.load %arg24[%c0_135, %c8_136] : memref<8x32xf32, #tpu.memory_space<vmem>>, vector<8x8xf32>
    tpu.vector_store %arg24[%c0_135, %c8_136], %394 {strides = array<i32>} : memref<8x32xf32, #tpu.memory_space<vmem>>, vector<8x8xf32>,
    %cst_137 = arith.constant 9.99999997E-7 : f32
    %396 = vector.broadcast %cst_137 : f32 to vector<8x1xf32>
    %397 = arith.addf %342, %396 : vector<8x1xf32>
    %398 = tpu.reciprocal %397 {approx = true} : vector<8x1xf32> -> vector<8x1xf32>
    %399 = vector.extract_strided_slice %373 {offsets = [0, 16], sizes = [1, 8], strides = [1, 1]} : vector<1x32xf32> to vector<1x8xf32>
    %cst_138 = arith.constant 1.250000e-07 : f32
    %400 = vector.broadcast %cst_138 : f32 to vector<1x8xf32>
    %401 = arith.mulf %400, %399 : vector<1x8xf32>
    %402 = vector.broadcast %401 : vector<1x8xf32> to vector<8x8xf32>
    %403 = arith.addf %348, %402 : vector<8x8xf32>
    %404 = vector.broadcast %398 : vector<8x1xf32> to vector<8x8xf32>
    %405 = arith.mulf %403, %404 : vector<8x8xf32>
    %c0_139 = arith.constant 0 : index
    %c16_140 = arith.constant 16 : index
    %406 = vector.load %arg24[%c0_139, %c16_140] : memref<8x32xf32, #tpu.memory_space<vmem>>, vector<8x8xf32>
    tpu.vector_store %arg24[%c0_139, %c16_140], %405 {strides = array<i32>} : memref<8x32xf32, #tpu.memory_space<vmem>>, vector<8x8xf32>,
    %cst_141 = arith.constant 9.99999997E-7 : f32
    %407 = vector.broadcast %cst_141 : f32 to vector<8x1xf32>
    %408 = arith.addf %364, %407 : vector<8x1xf32>
    %409 = tpu.reciprocal %408 {approx = true} : vector<8x1xf32> -> vector<8x1xf32>
    %410 = vector.extract_strided_slice %373 {offsets = [0, 24], sizes = [1, 8], strides = [1, 1]} : vector<1x32xf32> to vector<1x8xf32>
    %cst_142 = arith.constant 1.250000e-07 : f32
    %411 = vector.broadcast %cst_142 : f32 to vector<1x8xf32>
    %412 = arith.mulf %411, %410 : vector<1x8xf32>
    %413 = vector.broadcast %412 : vector<1x8xf32> to vector<8x8xf32>
    %414 = arith.addf %370, %413 : vector<8x8xf32>
    %415 = vector.broadcast %409 : vector<8x1xf32> to vector<8x8xf32>
    %416 = arith.mulf %414, %415 : vector<8x8xf32>
    %c0_143 = arith.constant 0 : index
    %c24_144 = arith.constant 24 : index
    %417 = vector.load %arg24[%c0_143, %c24_144] : memref<8x32xf32, #tpu.memory_space<vmem>>, vector<8x8xf32>
    tpu.vector_store %arg24[%c0_143, %c24_144], %416 {strides = array<i32>} : memref<8x32xf32, #tpu.memory_space<vmem>>, vector<8x8xf32>,
    %c0_145 = arith.constant 0 : index
    %c0_146 = arith.constant 0 : index
    %418 = vector.load %arg24[%c0_145, %c0_146] : memref<8x32xf32, #tpu.memory_space<vmem>>, vector<8x32xf32>
    %419 = arith.truncf %418 : vector<8x32xf32> to vector<8x32xbf16>
    %cst_147 = arith.constant dense<0.000000e+00> : vector<8x32xf32>
    %420 = tpu.matmul %419, %268, %cst_147 {dimension_numbers = #tpu.dot_dimension_numbers<[1], [0], [0], [1], [0, 0, 1, 1], [], []>} : vector<8x32xbf16>, vector<32x32xbf16>, vector<8x32xf32> -> vector<8x32xf32>
    %421 = arith.addf %204, %420 : vector<8x32xf32>
    %c0_148 = arith.constant 0 : index
    %c0_149 = arith.constant 0 : index
    %422 = vector.load %arg15[%c0_148, %c0_149] : memref<1x32xf32, #tpu.memory_space<vmem>>, vector<1x32xf32>
    %c0_150 = arith.constant 0 : index
    %c0_151 = arith.constant 0 : index
    %423 = vector.load %arg16[%c0_150, %c0_151] : memref<1x32xf32, #tpu.memory_space<vmem>>, vector<1x32xf32>
    %cst_152 = arith.constant dense<0.000000e+00> : vector<8xf32>
    %424 = vector.multi_reduction <add>, %421, %cst_152 [1] : vector<8x32xf32> to vector<8xf32>
    %425 = vector.shape_cast %424 : vector<8xf32> to vector<8x1xf32>
    %cst_153 = arith.constant 3.200000e+01 : f32
    %426 = vector.broadcast %cst_153 : f32 to vector<8x1xf32>
    %427 = arith.divf %425, %426 : vector<8x1xf32>
    %428 = vector.broadcast %427 : vector<8x1xf32> to vector<8x32xf32>
    %429 = arith.subf %421, %428 : vector<8x32xf32>
    %430 = arith.mulf %429, %429 : vector<8x32xf32>
    %cst_154 = arith.constant dense<0.000000e+00> : vector<8xf32>
    %431 = vector.multi_reduction <add>, %430, %cst_154 [1] : vector<8x32xf32> to vector<8xf32>
    %432 = vector.shape_cast %431 : vector<8xf32> to vector<8x1xf32>
    %cst_155 = arith.constant 3.200000e+01 : f32
    %433 = vector.broadcast %cst_155 : f32 to vector<8x1xf32>
    %434 = arith.divf %432, %433 : vector<8x1xf32>
    %435 = vector.broadcast %427 : vector<8x1xf32> to vector<8x32xf32>
    %436 = arith.subf %421, %435 : vector<8x32xf32>
    %cst_156 = arith.constant 9.99999974E-6 : f32
    %437 = vector.broadcast %cst_156 : f32 to vector<8x1xf32>
    %438 = arith.addf %434, %437 : vector<8x1xf32>
    %439 = math.rsqrt %438 : vector<8x1xf32>
    %440 = vector.broadcast %439 : vector<8x1xf32> to vector<8x32xf32>
    %441 = arith.mulf %436, %440 : vector<8x32xf32>
    %442 = vector.broadcast %422 : vector<1x32xf32> to vector<8x32xf32>
    %443 = arith.mulf %441, %442 : vector<8x32xf32>
    %444 = vector.broadcast %423 : vector<1x32xf32> to vector<8x32xf32>
    %445 = arith.addf %443, %444 : vector<8x32xf32>
    %446 = arith.truncf %445 : vector<8x32xf32> to vector<8x32xbf16>
    %c0_157 = arith.constant 0 : index
    %c0_158 = arith.constant 0 : index
    %447 = vector.load %arg17[%c0_157, %c0_158] : memref<32x128xbf16, #tpu.memory_space<vmem>>, vector<32x128xbf16>
    %cst_159 = arith.constant dense<0.000000e+00> : vector<8x128xf32>
    %448 = tpu.matmul %446, %447, %cst_159 {dimension_numbers = #tpu.dot_dimension_numbers<[1], [0], [0], [1], [0, 0, 1, 1], [], []>} : vector<8x32xbf16>, vector<32x128xbf16>, vector<8x128xf32> -> vector<8x128xf32>
    %c0_160 = arith.constant 0 : index
    %c0_161 = arith.constant 0 : index
    %449 = vector.load %arg18[%c0_160, %c0_161] : memref<1x128xf32, #tpu.memory_space<vmem>>, vector<1x128xf32>
    %450 = vector.broadcast %449 : vector<1x128xf32> to vector<8x128xf32>
    %451 = arith.addf %448, %450 : vector<8x128xf32>
    %452 = arith.mulf %451, %451 : vector<8x128xf32>
    %453 = arith.mulf %451, %452 : vector<8x128xf32>
    %cst_162 = arith.constant 4.471500e-02 : f32
    %454 = vector.broadcast %cst_162 : f32 to vector<8x128xf32>
    %455 = arith.mulf %454, %453 : vector<8x128xf32>
    %456 = arith.addf %451, %455 : vector<8x128xf32>
    %cst_163 = arith.constant 0.797884583 : f32
    %457 = vector.broadcast %cst_163 : f32 to vector<8x128xf32>
    %458 = arith.mulf %457, %456 : vector<8x128xf32>
    %459 = math.tanh %458 : vector<8x128xf32>
    %cst_164 = arith.constant 1.000000e+00 : f32
    %460 = vector.broadcast %cst_164 : f32 to vector<8x128xf32>
    %461 = arith.addf %460, %459 : vector<8x128xf32>
    %cst_165 = arith.constant 5.000000e-01 : f32
    %462 = vector.broadcast %cst_165 : f32 to vector<8x128xf32>
    %463 = arith.mulf %462, %461 : vector<8x128xf32>
    %464 = arith.mulf %451, %463 : vector<8x128xf32>
    %465 = arith.truncf %464 : vector<8x128xf32> to vector<8x128xbf16>
    %c0_166 = arith.constant 0 : index
    %c0_167 = arith.constant 0 : index
    %466 = vector.load %arg19[%c0_166, %c0_167] : memref<128x32xbf16, #tpu.memory_space<vmem>>, vector<128x32xbf16>
    %cst_168 = arith.constant dense<0.000000e+00> : vector<8x32xf32>
    %467 = tpu.matmul %465, %466, %cst_168 {dimension_numbers = #tpu.dot_dimension_numbers<[1], [0], [0], [1], [0, 0, 1, 1], [], []>} : vector<8x128xbf16>, vector<128x32xbf16>, vector<8x32xf32> -> vector<8x32xf32>
    %c0_169 = arith.constant 0 : index
    %c0_170 = arith.constant 0 : index
    %468 = vector.load %arg20[%c0_169, %c0_170] : memref<1x32xf32, #tpu.memory_space<vmem>>, vector<1x32xf32>
    %469 = vector.broadcast %468 : vector<1x32xf32> to vector<8x32xf32>
    %470 = arith.addf %467, %469 : vector<8x32xf32>
    %471 = arith.addf %421, %470 : vector<8x32xf32>
    %c0_171 = arith.constant 0 : index
    %c0_172 = arith.constant 0 : index
    %472 = vector.load %arg21[%c0_171, %c0_172] : memref<1x32xf32, #tpu.memory_space<vmem>>, vector<1x32xf32>
    %c0_173 = arith.constant 0 : index
    %c0_174 = arith.constant 0 : index
    %473 = vector.load %arg22[%c0_173, %c0_174] : memref<1x32xf32, #tpu.memory_space<vmem>>, vector<1x32xf32>
    %cst_175 = arith.constant dense<0.000000e+00> : vector<8xf32>
    %474 = vector.multi_reduction <add>, %471, %cst_175 [1] : vector<8x32xf32> to vector<8xf32>
    %475 = vector.shape_cast %474 : vector<8xf32> to vector<8x1xf32>
    %cst_176 = arith.constant 3.200000e+01 : f32
    %476 = vector.broadcast %cst_176 : f32 to vector<8x1xf32>
    %477 = arith.divf %475, %476 : vector<8x1xf32>
    %478 = vector.broadcast %477 : vector<8x1xf32> to vector<8x32xf32>
    %479 = arith.subf %471, %478 : vector<8x32xf32>
    %480 = arith.mulf %479, %479 : vector<8x32xf32>
    %cst_177 = arith.constant dense<0.000000e+00> : vector<8xf32>
    %481 = vector.multi_reduction <add>, %480, %cst_177 [1] : vector<8x32xf32> to vector<8xf32>
    %482 = vector.shape_cast %481 : vector<8xf32> to vector<8x1xf32>
    %cst_178 = arith.constant 3.200000e+01 : f32
    %483 = vector.broadcast %cst_178 : f32 to vector<8x1xf32>
    %484 = arith.divf %482, %483 : vector<8x1xf32>
    %485 = vector.broadcast %477 : vector<8x1xf32> to vector<8x32xf32>
    %486 = arith.subf %471, %485 : vector<8x32xf32>
    %cst_179 = arith.constant 9.99999974E-6 : f32
    %487 = vector.broadcast %cst_179 : f32 to vector<8x1xf32>
    %488 = arith.addf %484, %487 : vector<8x1xf32>
    %489 = math.rsqrt %488 : vector<8x1xf32>
    %490 = vector.broadcast %489 : vector<8x1xf32> to vector<8x32xf32>
    %491 = arith.mulf %486, %490 : vector<8x32xf32>
    %492 = vector.broadcast %472 : vector<1x32xf32> to vector<8x32xf32>
    %493 = arith.mulf %491, %492 : vector<8x32xf32>
    %494 = vector.broadcast %473 : vector<1x32xf32> to vector<8x32xf32>
    %495 = arith.addf %493, %494 : vector<8x32xf32>
    %c0_180 = arith.constant 0 : index
    %c0_181 = arith.constant 0 : index
    %c0_182 = arith.constant 0 : index
    %496 = vector.load %arg23[%c0_180, %c0_181, %c0_182] : memref<1x8x32xf32, #tpu.memory_space<vmem>>, vector<1x8x32xf32>
    %497 = vector.shape_cast %496 : vector<1x8x32xf32> to vector<8x32xf32>
    %498 = vector.shape_cast %495 : vector<8x32xf32> to vector<1x8x32xf32>
    tpu.vector_store %arg23[%c0_180, %c0_181, %c0_182], %498 {strides = array<i32>} : memref<1x8x32xf32, #tpu.memory_space<vmem>>, vector<1x8x32xf32>,
    return
  }
  func.func @transform_0(%arg0: i32) -> (i32, i32, i32) {
    %c0_i32 = arith.constant 0 : i32
    %c0_i32_0 = arith.constant 0 : i32
    %c0_i32_1 = arith.constant 0 : i32
    return %arg0, %c0_i32, %c0_i32_0 : i32, i32, i32
  }
  func.func @transform_1(%arg0: i32) -> (i32, i32, i32) {
    %c0_i32 = arith.constant 0 : i32
    %c0_i32_0 = arith.constant 0 : i32
    %c0_i32_1 = arith.constant 0 : i32
    return %arg0, %c0_i32, %c0_i32_0 : i32, i32, i32
  }
  func.func @transform_2(%arg0: i32) -> (i32, i32) {
    %c0_i32 = arith.constant 0 : i32
    %c0_i32_0 = arith.constant 0 : i32
    %c0_i32_1 = arith.constant 0 : i32
    return %c0_i32, %c0_i32_0 : i32, i32
  }
  func.func @transform_3(%arg0: i32) -> (i32, i32) {
    %c0_i32 = arith.constant 0 : i32
    %c0_i32_0 = arith.constant 0 : i32
    %c0_i32_1 = arith.constant 0 : i32
    return %c0_i32, %c0_i32_0 : i32, i32
  }
  func.func @transform_4(%arg0: i32) -> (i32, i32) {
    %c0_i32 = arith.constant 0 : i32
    %c0_i32_0 = arith.constant 0 : i32
    %c0_i32_1 = arith.constant 0 : i32
    return %c0_i32, %c0_i32_0 : i32, i32
  }
  func.func @transform_5(%arg0: i32) -> (i32, i32) {
    %c0_i32 = arith.constant 0 : i32
    %c0_i32_0 = arith.constant 0 : i32
    %c0_i32_1 = arith.constant 0 : i32
    return %c0_i32, %c0_i32_0 : i32, i32
  }
  func.func @transform_6(%arg0: i32) -> (i32, i32) {
    %c0_i32 = arith.constant 0 : i32
    %c0_i32_0 = arith.constant 0 : i32
    %c0_i32_1 = arith.constant 0 : i32
    return %c0_i32, %c0_i32_0 : i32, i32
  }
  func.func @transform_7(%arg0: i32) -> (i32, i32) {
    %c0_i32 = arith.constant 0 : i32
    %c0_i32_0 = arith.constant 0 : i32
    %c0_i32_1 = arith.constant 0 : i32
    return %c0_i32, %c0_i32_0 : i32, i32
  }
  func.func @transform_8(%arg0: i32) -> (i32, i32) {
    %c0_i32 = arith.constant 0 : i32
    %c0_i32_0 = arith.constant 0 : i32
    %c0_i32_1 = arith.constant 0 : i32
    return %c0_i32, %c0_i32_0 : i32, i32
  }
  func.func @transform_9(%arg0: i32) -> (i32, i32) {
    %c0_i32 = arith.constant 0 : i32
    %c0_i32_0 = arith.constant 0 : i32
    %c0_i32_1 = arith.constant 0 : i32
    return %c0_i32, %c0_i32_0 : i32, i32
  }
  func.func @transform_10(%arg0: i32) -> (i32, i32) {
    %c0_i32 = arith.constant 0 : i32
    %c0_i32_0 = arith.constant 0 : i32
    %c0_i32_1 = arith.constant 0 : i32
    return %c0_i32, %c0_i32_0 : i32, i32
  }
  func.func @transform_11(%arg0: i32) -> (i32, i32) {
    %c0_i32 = arith.constant 0 : i32
    %c0_i32_0 = arith.constant 0 : i32
    %c0_i32_1 = arith.constant 0 : i32
    return %c0_i32, %c0_i32_0 : i32, i32
  }
  func.func @transform_12(%arg0: i32) -> (i32, i32) {
    %c0_i32 = arith.constant 0 : i32
    %c0_i32_0 = arith.constant 0 : i32
    %c0_i32_1 = arith.constant 0 : i32
    return %c0_i32, %c0_i32_0 : i32, i32
  }
  func.func @transform_13(%arg0: i32) -> (i32, i32) {
    %c0_i32 = arith.constant 0 : i32
    %c0_i32_0 = arith.constant 0 : i32
    %c0_i32_1 = arith.constant 0 : i32
    return %c0_i32, %c0_i32_0 : i32, i32
  }
  func.func @transform_14(%arg0: i32) -> (i32, i32) {
    %c0_i32 = arith.constant 0 : i32
    %c0_i32_0 = arith.constant 0 : i32
    %c0_i32_1 = arith.constant 0 : i32
    return %c0_i32, %c0_i32_0 : i32, i32
  }
  func.func @transform_15(%arg0: i32) -> (i32, i32) {
    %c0_i32 = arith.constant 0 : i32
    %c0_i32_0 = arith.constant 0 : i32
    %c0_i32_1 = arith.constant 0 : i32
    return %c0_i32, %c0_i32_0 : i32, i32
  }
  func.func @transform_16(%arg0: i32) -> (i32, i32) {
    %c0_i32 = arith.constant 0 : i32
    %c0_i32_0 = arith.constant 0 : i32
    %c0_i32_1 = arith.constant 0 : i32
    return %c0_i32, %c0_i32_0 : i32, i32
  }
  func.func @transform_17(%arg0: i32) -> (i32, i32) {
    %c0_i32 = arith.constant 0 : i32
    %c0_i32_0 = arith.constant 0 : i32
    %c0_i32_1 = arith.constant 0 : i32
    return %c0_i32, %c0_i32_0 : i32, i32
  }
  func.func @transform_18(%arg0: i32) -> (i32, i32) {
    %c0_i32 = arith.constant 0 : i32
    %c0_i32_0 = arith.constant 0 : i32
    %c0_i32_1 = arith.constant 0 : i32
    return %c0_i32, %c0_i32_0 : i32, i32
  }
  func.func @transform_19(%arg0: i32) -> (i32, i32) {
    %c0_i32 = arith.constant 0 : i32
    %c0_i32_0 = arith.constant 0 : i32
    %c0_i32_1 = arith.constant 0 : i32
    return %c0_i32, %c0_i32_0 : i32, i32
  }
  func.func @transform_20(%arg0: i32) -> (i32, i32) {
    %c0_i32 = arith.constant 0 : i32
    %c0_i32_0 = arith.constant 0 : i32
    %c0_i32_1 = arith.constant 0 : i32
    return %c0_i32, %c0_i32_0 : i32, i32
  }
  func.func @transform_21(%arg0: i32) -> (i32, i32) {
    %c0_i32 = arith.constant 0 : i32
    %c0_i32_0 = arith.constant 0 : i32
    %c0_i32_1 = arith.constant 0 : i32
    return %c0_i32, %c0_i32_0 : i32, i32
  }
  func.func @transform_22(%arg0: i32) -> (i32, i32, i32) {
    %c0_i32 = arith.constant 0 : i32
    %c0_i32_0 = arith.constant 0 : i32
    %c0_i32_1 = arith.constant 0 : i32
    return %arg0, %c0_i32, %c0_i32_0 : i32, i32, i32
  }
}

</mosaic_0001>

<bundles_post_ra>
// kernel: tpu_custom_call.1
= control target key start
LH: loop header
LB: loop body
LE: loop exit
PB: predicated region body
PF: predicated region fallthrough
CT: control target
= control target key end

     0   :  { %s4565_s0 = inlined_call_operand.hbm [shape: f32[2,1,8], index: 0, kind: input, shape index: {}]   ;;  %s4566_s1 = inlined_call_operand.vmem [shape: f32[2,8,32], index: 1, kind: input, shape index: {}]   ;;  %s4567_s2 = inlined_call_operand.hbm [shape: f32[1,32], index: 2, kind: input, shape index: {}]   ;;  %s4568_s3 = inlined_call_operand.hbm [shape: f32[1,32], index: 3, kind: input, shape index: {}]   ;;  %s4569_s4 = inlined_call_operand.hbm [shape: f32[1,32], index: 4, kind: input, shape index: {}]   ;;  %s4570_s5 = inlined_call_operand.hbm [shape: f32[1,32], index: 5, kind: input, shape index: {}]   ;;  %s4571_s6 = inlined_call_operand.vmem [shape: bf16[32,96], index: 6, kind: input, shape index: {}]   ;;  %s4572_s7 = inlined_call_operand.vmem [shape: bf16[32,32], index: 7, kind: input, shape index: {}]   ;;  %s4573_s8 = inlined_call_operand.hbm [shape: f32[1,32], index: 8, kind: input, shape index: {}]   ;;  %s4574_s9 = inlined_call_operand.hbm [shape: f32[1,32], index: 9, kind: input, shape index: {}]   ;;  %s4575_s10 = inlined_call_operand.vmem [shape: bf16[32,32], index: 10, kind: input, shape index: {}]   ;;  %s4576_s11 = inlined_call_operand.vmem [shape: bf16[32,32], index: 11, kind: input, shape index: {}]   ;;  %s4577_s12 = inlined_call_operand.vmem [shape: bf16[32,32], index: 12, kind: input, shape index: {}]   ;;  %s4578_s13 = inlined_call_operand.hbm [shape: bf16[32,32], index: 13, kind: input, shape index: {}]   ;;  %s4579_s14 = inlined_call_operand.hbm [shape: f32[1,32], index: 14, kind: input, shape index: {}]   ;;  %s4580_s15 = inlined_call_operand.hbm [shape: f32[1,32], index: 15, kind: input, shape index: {}]   ;;  %s4581_s16 = inlined_call_operand.hbm [shape: bf16[32,128], index: 16, kind: input, shape index: {}]   ;;  %s4582_s17 = inlined_call_operand.hbm [shape: f32[1,128], index: 17, kind: input, shape index: {}]   ;;  %s4583_s18 = inlined_call_operand.vmem [shape: bf16[128,32], index: 18, kind: input, shape index: {}]   ;;  %s4584_s19 = inlined_call_operand.vmem [shape: f32[1,32], index: 19, kind: input, shape index: {}]   ;;  %s4585_s20 = inlined_call_operand.vmem [shape: f32[1,32], index: 20, kind: input, shape index: {}]   ;;  %s4586_s21 = inlined_call_operand.vmem [shape: f32[1,32], index: 21, kind: input, shape index: {}]   ;;  %s4587_s22 = inlined_call_operand.hbm [shape: f32[2,8,32], index: 22, kind: output, shape index: {}]  }
   0x1   :  { %4597 = sst [smem:[#allocation33_spill]] %s4565_s0 }
   0x2   :  { %4598 = sst [smem:[#allocation34_spill]] %s4566_s1 }
   0x3   :  { %4599 = sst [smem:[#allocation35_spill]] %s4567_s2 }
   0x4   :  { %4600 = sst [smem:[#allocation36_spill]] %s4568_s3 }
   0x5   :  { %4601 = sst [smem:[#allocation37_spill]] %s4569_s4 }
   0x6   :  { %4602 = sst [smem:[#allocation38_spill]] %s4570_s5 }
   0x7   :  { %4603 = sst [smem:[#allocation39_spill]] %s4571_s6 }
   0x8   :  { %4604 = sst [smem:[#allocation40_spill]] %s4572_s7 }
   0x9   :  { %4605 = sst [smem:[#allocation41_spill]] %s4573_s8 }
   0xa   :  { %4606 = sst [smem:[#allocation42_spill]] %s4574_s9 }
   0xb   :  { %4607 = sst [smem:[#allocation43_spill]] %s4578_s13 }
   0xc   :  { %4608 = sst [smem:[#allocation44_spill]] %s4579_s14 }
   0xd   :  { %4609 = sst [smem:[#allocation45_spill]] %s4580_s15 }
   0xe   :  { %4610 = sst [smem:[#allocation46_spill]] %s4581_s16 }
   0xf   :  { %4611 = sst [smem:[#allocation47_spill]] %s4582_s17 }
  0x10   :  { %4612 = sst [smem:[#allocation48_spill]] %s4585_s20 }
  0x11   :  { %4613 = sst [smem:[#allocation49_spill]] %s4586_s21 }
  0x12   :  { %4614 = sst [smem:[#allocation50_spill]] %s4587_s22 }
  0x13   :  { %27 = vsyncpa [#allocation4], 0 }
  0x14   :  { %29 = vsyncpa [#allocation4 + $0x1], 0 }
  0x15   :  { %30 = vsyncpa [#allocation7], 0 }
  0x16   :  { %31 = vsyncpa [#allocation10], 0 }
  0x17   :  { %32 = vsyncpa [#allocation13], 0 }
  0x18   :  { %33 = vsyncpa [#allocation16], 0 }
  0x19   :  { %34 = vsyncpa [#allocation19], 0 }
  0x1a   :  { %35 = vsyncpa [#allocation22], 0 }
  0x1b   :  { %36 = vsyncpa [#allocation5], 0 }
  0x1c   :  { %38 = vsyncpa [#allocation5 + $0x1], 0  ;;  %s3941_s3 = smov 0   ;;  %s3943_s28 = smov 0  }
  0x1d   :  { %s3945_s29 = smov 0   ;;  %s3947_s30 = smov 0  }
  0x1e LB: > { %s3795_s4 = smov [#allocation6]   ;;  %s3962_s23 = sadd.s32 4294967295, %s3793_s30   ;;  %s3793_s30 = sphi %s3947_s30, %s4665_s30   ;;  %s3789_s29 = sphi %s3945_s29, %s4664_s29   ;;  %s3785_s28 = sphi %s3943_s28, %s4663_s28   ;;  %s3781_s3 = sphi %s3941_s3, %s4662_s3  }
  0x1f   : > { %s560_s0 = sshll.u32 %s3795_s4, 4  ;;  %p2811_p0 = scmp.ge.s32.totalorder %s3793_s30, 1  ;;  %s561_s0 = int_to_ptr.vmem [resolvable:$true] %s560_s0 }
  0x20   : > { %p4591_p1 = scmp.eq.s32.totalorder %s3962_s23, 0  ;;  %p547_p2 = scmp.lt.s32.totalorder %s3793_s30, 3 }
  0x21   : > { %s3796_s5 = smov [#allocation9]   ;;  %s3797_s6 = smov [#allocation12]  }
  0x22   : > { %p3967_p3 = pnand %p2811_p0, %p547_p2  ;;  %s582_s24 = sshll.u32 %s3796_s5, 4  ;;  %s3974_s24 = int_to_ptr.vmem [resolvable:$true] %s582_s24 }
  0x23   : > { %s610_s25 = sshll.u32 %s3797_s6, 4  ;;  %s3798_s2 = smov [#allocation15]   ;;  %s3982_s25 = int_to_ptr.vmem [resolvable:$true] %s610_s25 }
  0x24   : > { %s4615_s1 = scalar_select %p3967_p3, 1, 0 }
  0x25   : > { %p3182_p5 = pneg %p3967_p3  ;;  %s3984_s27 = sshll.u32 %s3798_s2, 4  ;;  %s641_s27 = int_to_ptr.vmem [resolvable:$true] %s3984_s27 }
  0x26   : > { %s3402_s5 = scalar_lea.vmem %s561_s0, 16  ;;  %s3409_s6 = scalar_lea.vmem %s561_s0, 32 }
  0x27   : > { %p3978_p6 = pnand %p3182_p5, %p4591_p1  ;;  %p3403_p8 = scmp.ne.s32.totalorder %s561_s0, %s3402_s5 }
  0x28   : > { %p3410_p11 = scmp.lt.s32.totalorder %s561_s0, %s561_s0  ;;  %p3411_p12 = scmp.lt.s32.totalorder %s3409_s6, %s3402_s5 }
  0x29   : > { %p3988_p7 = pneg %p3978_p6 }
  0x2a   : > { %p3412_p13 = por %p3411_p12, %p3410_p11 }
  0x2b   : > { %p3405_p9 = pnand %p3403_p8, %p3988_p7 }
  0x2d   : > { %p3406_p10 = pneg %p3405_p9 }
  0x2f   : > { %p3413_p0 = pnand %p3412_p13, %p3406_p10 }
  0x31   : > { %3416 = shalt.err (!%p3413_p0)
}
  0x32   : > { %s4618_s21 = sld [smem:[#allocation35_spill]]  ;;  %s3428_s20 = scalar_lea.vmem %s3974_s24, 16 }
  0x33   : > { %p3429_p2 = scmp.ne.s32.totalorder %s3974_s24, %s3428_s20  ;;  %s3435_s5 = scalar_lea.vmem %s3974_s24, 32 }
  0x34   : > { %p3436_p9 = scmp.lt.s32.totalorder %s3974_s24, %s3974_s24  ;;  %p3437_p10 = scmp.lt.s32.totalorder %s3435_s5, %s3428_s20 }
  0x35   : > { %p3431_p5 = pnand %p3429_p2, %p3988_p7 }
  0x36   : > { %p3438_p11 = por %p3437_p10, %p3436_p9 }
  0x37   : > { %p3432_p8 = pneg %p3431_p5 }
  0x38   : > { %3185 = dma.hbm_to_vmem [thread:$0]  (!%p3978_p6), %s4618_s21, 16, %s561_s0, [#allocation7]  }
  0x39   : > { %p3439_p12 = pnand %p3438_p11, %p3432_p8 }
  0x3b   : > { %3442 = shalt.err (!%p3439_p12)
}
  0x3c   : > { %s4619_s2 = sld [smem:[#allocation37_spill]]  ;;  %s3454_s21 = scalar_lea.vmem %s3982_s25, 16 }
  0x3d   : > { %p3455_p13 = scmp.ne.s32.totalorder %s3982_s25, %s3454_s21  ;;  %s3461_s20 = scalar_lea.vmem %s3982_s25, 32 }
  0x3e   : > { %p3462_p5 = scmp.lt.s32.totalorder %s3982_s25, %s3982_s25  ;;  %p3463_p8 = scmp.lt.s32.totalorder %s3461_s20, %s3454_s21 }
  0x3f   : > { %p3457_p0 = pnand %p3455_p13, %p3988_p7 }
  0x40   : > { %p3464_p9 = por %p3463_p8, %p3462_p5 }
  0x41   : > { %p3458_p2 = pneg %p3457_p0 }
  0x42   : > { %3191 = dma.hbm_to_vmem [thread:$0]  (!%p3978_p6), %s4619_s2, 16, %s3974_s24, [#allocation10]  }
  0x43   : > { %p3465_p10 = pnand %p3464_p9, %p3458_p2 }
  0x45   : > { %3468 = shalt.err (!%p3465_p10)
}
  0x46   : > { %s4620_s8 = sld [smem:[#allocation41_spill]]  ;;  %s3480_s24 = scalar_lea.vmem %s641_s27, 256 }
  0x47   : > { %p3481_p11 = scmp.ne.s32.totalorder %s641_s27, %s3480_s24  ;;  %p3488_p0 = scmp.lt.s32.totalorder %s641_s27, %s641_s27 }
  0x48   : > { %p3489_p4 = scmp.lt.s32.totalorder %s3480_s24, %s3480_s24 }
  0x49   : > { %p3483_p12 = pnand %p3481_p11, %p3988_p7 }
  0x4a   : > { %p3490_p5 = por %p3489_p4, %p3488_p0 }
  0x4b   : > { %p3484_p13 = pneg %p3483_p12 }
  0x4c   : > { %3197 = dma.hbm_to_vmem [thread:$0]  (!%p3978_p6), %s4620_s8, 16, %s3982_s25, [#allocation13]  }
  0x4d   : > { %p3491_p2 = pnand %p3490_p5, %p3484_p13 }
  0x4f   : > { %3494 = shalt.err (!%p3491_p2)
}
  0x50   : > { %s4593_s22 = smov 64   ;;  %s4594_s6 = smov 4  }
  0x51   : > { %s4621_s13 = sld [smem:[#allocation43_spill]]  ;;  %s3801_s21 = smov [#allocation18]  }
  0x52   : > { %s665_s20 = sshll.u32 %s3801_s21, 4  ;;  %s3802_s0 = smov [#allocation8]   ;;  %s666_s20 = int_to_ptr.vmem [resolvable:$true] %s665_s20 }
  0x53   : > { %s571_s5 = sshll.u32 %s3802_s0, 4  ;;  %s3506_s24 = scalar_lea.vmem %s666_s20, 16  ;;  %s572_s5 = int_to_ptr.vmem [resolvable:$true] %s571_s5 }
  0x54   : > { %p3507_p4 = scmp.ne.s32.totalorder %s666_s20, %s3506_s24  ;;  %s3513_s8 = scalar_lea.vmem %s666_s20, 32 }
  0x55   : > { %p3514_p10 = scmp.lt.s32.totalorder %s666_s20, %s666_s20  ;;  %p3515_p11 = scmp.lt.s32.totalorder %s3513_s8, %s3506_s24 }
  0x56   : > { %p3509_p8 = pnand %p3507_p4, %p3988_p7 }
  0x57   : > { %3203 = dma.hbm_to_vmem [thread:$0]  (!%p3978_p6), %s4621_s13, 256, %s641_s27, [#allocation16], %s4593_s22, %s4593_s22, %s4594_s6  }
  0x58   : > { %p3510_p9 = pneg %p3509_p8  ;;  %p3516_p12 = por %p3515_p11, %p3514_p10 }
  0x5a   : > { %p3517_p13 = pnand %p3516_p12, %p3510_p9 }
  0x5c   : > { %3520 = shalt.err (!%p3517_p13)
}
  0x5d   : > { %s4622_s15 = sld [smem:[#allocation45_spill]]  ;;  %s3532_s2 = scalar_lea.vmem %s572_s5, 16 }
  0x5e   : > { %p3533_p0 = scmp.ne.s32.totalorder %s572_s5, %s3532_s2  ;;  %s3539_s21 = scalar_lea.vmem %s572_s5, 32 }
  0x5f   : > { %p3540_p4 = scmp.lt.s32.totalorder %s572_s5, %s572_s5  ;;  %p3541_p8 = scmp.lt.s32.totalorder %s3539_s21, %s3532_s2 }
  0x60   : > { %p3535_p5 = pnand %p3533_p0, %p3988_p7 }
  0x61   : > { %p3542_p1 = por %p3541_p8, %p3540_p4 }
  0x62   : > { %p3536_p2 = pneg %p3535_p5 }
  0x63   : > { %3209 = dma.hbm_to_vmem [thread:$0]  (!%p3978_p6), %s4622_s15, 16, %s666_s20, [#allocation19]  }
  0x64   : > { %p3543_p3 = pnand %p3542_p1, %p3536_p2 }
  0x66   : > { %3546 = shalt.err (!%p3543_p3)
}
  0x67   : > { %s4623_s24 = sld [smem:[#allocation36_spill]]  ;;  %s3803_s27 = smov [#allocation11]  }
  0x68   : > { %s593_s20 = sshll.u32 %s3803_s27, 4  ;;  %s3804_s25 = smov [#allocation14]   ;;  %s594_s20 = int_to_ptr.vmem [resolvable:$true] %s593_s20 }
  0x69   : > { %s621_s22 = sshll.u32 %s3804_s25, 4  ;;  %s3558_s6 = scalar_lea.vmem %s594_s20, 16  ;;  %s622_s22 = int_to_ptr.vmem [resolvable:$true] %s621_s22 }
  0x6a   : > { %p3559_p9 = scmp.ne.s32.totalorder %s594_s20, %s3558_s6  ;;  %s3565_s2 = scalar_lea.vmem %s594_s20, 32 }
  0x6b   : > { %p3566_p1 = scmp.lt.s32.totalorder %s594_s20, %s594_s20  ;;  %p3567_p3 = scmp.lt.s32.totalorder %s3565_s2, %s3558_s6 }
  0x6c   : > { %p3561_p10 = pnand %p3559_p9, %p3988_p7 }
  0x6d   : > { %3188 = dma.hbm_to_vmem [thread:$0]  (!%p3978_p6), %s4623_s24, 16, %s572_s5, [#allocation7]  }
  0x6e   : > { %p3562_p11 = pneg %p3561_p10  ;;  %p3568_p12 = por %p3567_p3, %p3566_p1 }
  0x70   : > { %p3569_p13 = pnand %p3568_p12, %p3562_p11 }
  0x72   : > { %3572 = shalt.err (!%p3569_p13)
}
  0x73   : > { %s4624_s8 = sld [smem:[#allocation38_spill]]  ;;  %s3584_s0 = scalar_lea.vmem %s622_s22, 16 }
  0x74   : > { %p3585_p0 = scmp.ne.s32.totalorder %s622_s22, %s3584_s0  ;;  %s3591_s24 = scalar_lea.vmem %s622_s22, 32 }
  0x75   : > { %p3592_p4 = scmp.lt.s32.totalorder %s622_s22, %s622_s22  ;;  %p3593_p8 = scmp.lt.s32.totalorder %s3591_s24, %s3584_s0 }
  0x76   : > { %p3587_p5 = pnand %p3585_p0, %p3988_p7 }
  0x77   : > { %p3594_p9 = por %p3593_p8, %p3592_p4 }
  0x78   : > { %p3588_p2 = pneg %p3587_p5 }
  0x79   : > { %3194 = dma.hbm_to_vmem [thread:$0]  (!%p3978_p6), %s4624_s8, 16, %s594_s20, [#allocation10]  }
  0x7a   : > { %p3595_p10 = pnand %p3594_p9, %p3588_p2 }
  0x7c   : > { %3598 = shalt.err (!%p3595_p10)
}
  0x7d   : > { %s4625_s9 = sld [smem:[#allocation42_spill]]  ;;  %s3805_s25 = smov [#allocation17]  }
  0x7e   : > { %s654_s20 = sshll.u32 %s3805_s25, 4  ;;  %s3806_s2 = smov [#allocation20]   ;;  %s655_s20 = int_to_ptr.vmem [resolvable:$true] %s654_s20 }
  0x7f   : > { %s675_s5 = sshll.u32 %s3806_s2, 4  ;;  %s3610_s21 = scalar_lea.vmem %s655_s20, 16  ;;  %s676_s5 = int_to_ptr.vmem [resolvable:$true] %s675_s5 }
  0x80   : > { %p3611_p11 = scmp.ne.s32.totalorder %s655_s20, %s3610_s21  ;;  %s3617_s8 = scalar_lea.vmem %s655_s20, 32 }
  0x81   : > { %p3618_p12 = scmp.lt.s32.totalorder %s655_s20, %s655_s20  ;;  %p3619_p13 = scmp.lt.s32.totalorder %s3617_s8, %s3610_s21 }
  0x82   : > { %p3613_p1 = pnand %p3611_p11, %p3988_p7 }
  0x83   : > { %3200 = dma.hbm_to_vmem [thread:$0]  (!%p3978_p6), %s4625_s9, 16, %s622_s22, [#allocation13]  }
  0x84   : > { %p3614_p3 = pneg %p3613_p1  ;;  %p3620_p0 = por %p3619_p13, %p3618_p12 }
  0x86   : > { %p3621_p5 = pnand %p3620_p0, %p3614_p3 }
  0x88   : > { %3624 = shalt.err (!%p3621_p5)
}
  0x89   : > { %s4626_s14 = sld [smem:[#allocation44_spill]]  ;;  %s3636_s24 = scalar_lea.vmem %s676_s5, 256 }
  0x8a   : > { %p3637_p2 = scmp.ne.s32.totalorder %s676_s5, %s3636_s24  ;;  %p3644_p9 = scmp.lt.s32.totalorder %s676_s5, %s676_s5 }
  0x8b   : > { %p3645_p10 = scmp.lt.s32.totalorder %s3636_s24, %s3636_s24 }
  0x8c   : > { %p3639_p4 = pnand %p3637_p2, %p3988_p7 }
  0x8d   : > { %p3646_p11 = por %p3645_p10, %p3644_p9 }
  0x8e   : > { %p3640_p8 = pneg %p3639_p4 }
  0x8f   : > { %3206 = dma.hbm_to_vmem [thread:$0]  (!%p3978_p6), %s4626_s14, 16, %s655_s20, [#allocation16]  }
  0x90   : > { %p3647_p1 = pnand %p3646_p11, %p3640_p8 }
  0x92   : > { %3650 = shalt.err (!%p3647_p1)
}
  0x93   : > { %s4627_s6 = smov 4   ;;  %s4628_s27 = smov 64  }
  0x94   : > { %s4629_s16 = sld [smem:[#allocation46_spill]]  ;;  %s3807_s20 = smov [#allocation21]  }
  0x95   : > { %s689_s21 = sshll.u32 %s3807_s20, 4  ;;  %s690_s21 = int_to_ptr.vmem [resolvable:$true] %s689_s21 }
  0x96   : > { %s3662_s8 = scalar_lea.vmem %s690_s21, 16  ;;  %s3669_s22 = scalar_lea.vmem %s690_s21, 32 }
  0x97   : > { %p3663_p3 = scmp.ne.s32.totalorder %s690_s21, %s3662_s8  ;;  %p3670_p0 = scmp.lt.s32.totalorder %s690_s21, %s690_s21 }
  0x98   : > { %p3671_p5 = scmp.lt.s32.totalorder %s3669_s22, %s3662_s8 }
  0x99   : > { %p3665_p12 = pnand %p3663_p3, %p3988_p7 }
  0x9a   : > { %3212 = dma.hbm_to_vmem [thread:$0]  (!%p3978_p6), %s4629_s16, 256, %s676_s5, [#allocation19], %s4628_s27, %s4628_s27, %s4627_s6  }
  0x9b   : > { %p3666_p13 = pneg %p3665_p12  ;;  %p3672_p2 = por %p3671_p5, %p3670_p0 }
  0x9d   : > { %p3673_p4 = pnand %p3672_p2, %p3666_p13 }
  0x9f   : > { %3676 = shalt.err (!%p3673_p4)
}
  0xa0   : > { %s4630_s17 = sld [smem:[#allocation47_spill]]  ;;  %s2810_s4 = sadd.s32 4294967294, %s3793_s30  }
  0xa1   : > { %s4090_s26 = sadd.s32 1, %s3793_s30   ;;  %s51_s5 = sadd.s32 1, %s3789_s29 }
  0xa2   : > { %s48_s6 = ssub.s32 %s3793_s30, %s4090_s26  ;;  %p58_p7 = scmp.ne.s32.totalorder %s3789_s29, %s3785_s28 }
  0xa3   : > { %p49_p8 = scmp.eq.s32.totalorder %s48_s6, 0  ;;  %p59_p9 = scmp.eq.s32.totalorder %s3793_s30, 0 }
  0xa4   : > { %p64_p10 = scmp.ne.s32.totalorder %s3785_s28, %s3781_s3  ;;  %p534_p11 = scmp.eq.s32.totalorder %s3962_s23, 1 }
  0xa5   : > { %s4102_s27 = scalar_select %p49_p8, %s3789_s29, %s51_s5  }
  0xa6   : > { %3215 = dma.hbm_to_vmem [thread:$0]  (!%p3978_p6), %s4630_s17, 16, %s690_s21, [#allocation22]  }
  0xa7   : > { %4631 = sst [smem:[#allocation32_spill]] %s4102_s27  ;;  %p60_p1 = por %p59_p9, %p58_p7 }
  0xa8   : > { %p4632_p3 = scmp.eq.s32.totalorder %s3962_s23, 0  ;;  %p4110_p6 = por %p534_p11, %p58_p7 }
  0xa9   : > { %p540_p13 = scmp.eq.s32.totalorder %s2810_s4, 1  ;;  %p3235_p0 = scmp.lt.s32.totalorder %s3793_s30, 2 }
  0xaa   : > { %p4106_p12 = por %p4632_p3, %p64_p10  ;;  %s712_s20 = sand.u32 1, %s3789_s29  }
  0xab   : > { %s4634_s2 = scalar_select %p4110_p6, 1, 0 }
  0xac   : > { %s4633_s25 = scalar_select %p4106_p12, 1, 0 }
  0xad   : > { %p4116_p5 = por %p540_p13, %p64_p10  ;;  %s2824_s8 = sshll.u32 %s3793_s30, 4 }
  0xae   : > { %s4636_s24 = sld [smem:[#allocation33_spill]]  ;;  %s715_s6 = scalar_lea.vmem [#allocation3], %s712_s20 }
  0xaf   : > { %s4635_s21 = scalar_select %p4116_p5, 1, 0 }
  0xb0   : > { %s722_s9 = sshll.u32 %s715_s6, 4  ;;  %p4126_p2 = pnand %p3235_p0, %p60_p1  ;;  %s723_s9 = int_to_ptr.vmem [resolvable:$true] %s722_s9 }
  0xb1   : > { %s713_s13 = scalar_lea.sflag [#allocation4], %s712_s20 }
  0xb2   : > { %p3679_p7 = pneg %p4126_p2 }
  0xb4   : > { %s4124_s5 = scalar_lea.hbm %s4636_s24, %s2824_s8  ;;  %s3682_s0 = scalar_lea.hbm %s4636_s24, 32 }
  0xb5   : > { %s3677_s14 = scalar_lea.hbm %s4124_s5, 16  ;;  %p3683_p10 = scmp.lt.s32.totalorder %s4124_s5, %s4636_s24 }
  0xb6   : > { %p3678_p4 = scmp.ne.s32.totalorder %s4124_s5, %s3677_s14  ;;  %p3684_p11 = scmp.lt.s32.totalorder %s3682_s0, %s3677_s14 }
  0xb8   : > { %p3680_p8 = pnand %p3679_p7, %p3678_p4  ;;  %p3685_p1 = por %p3684_p11, %p3683_p10 }
  0xba   : > { %p3681_p9 = pneg %p3680_p8 }
  0xbc   : > { %p3686_p3 = pnand %p3685_p1, %p3681_p9 }
  0xbe   : > { %3689 = shalt.err (!%p3686_p3)
}
  0xbf   : > { %s3690_s6 = scalar_lea.vmem %s723_s9, 16  ;;  %s3808_s20 = smov [#allocation3]  }
  0xc0   : > { %p3691_p13 = scmp.ne.s32.totalorder %s723_s9, %s3690_s6  ;;  %s3695_s17 = sshll.u32 %s3808_s20, 4  ;;  %s3696_s17 = int_to_ptr.vmem [resolvable:$false] %s3695_s17 }
  0xc1   : > { %s3697_s27 = scalar_lea.vmem %s3696_s17, 32  ;;  %p3698_p4 = scmp.lt.s32.totalorder %s723_s9, %s3696_s17 }
  0xc2   : > { %p3693_p0 = pnand %p3691_p13, %p3679_p7  ;;  %p3699_p8 = scmp.lt.s32.totalorder %s3697_s27, %s3690_s6 }
  0xc4   : > { %p3694_p5 = pneg %p3693_p0  ;;  %p3700_p6 = por %p3699_p8, %p3698_p4 }
  0xc6   : > { %p3701_p12 = pnand %p3700_p6, %p3694_p5 }
  0xc8   : > { %3704 = shalt.err (!%p3701_p12)
}
  0xc9   : > { %3219 = dma.hbm_to_vmem [thread:$0]  (!%p4126_p2), %s4124_s5, 16, %s723_s9, %s713_s13  }
  0xca   : > { %p4638_p9 = scmp.ne.s32.totalorder %s4615_s1, 0 }
  0xcb   : > { %s4147_s14 = sand.u32 (!%p4638_p9), 1, %s3785_s28   ;;  %p4639_p7 = scmp.ne.s32.totalorder (!%p4638_p9), %s4633_s25, 0 }
  0xcc   : > { %738 = sbr.rel (%p4638_p9) target bundleno = 4367 (0x110f), region = 108  ;;  %s741_s15 = scalar_lea.sflag (!%p4638_p9), [#allocation4], %s4147_s14 }
  0xcd   : > { %s743_s16 = scalar_lea.vmem (!%p4638_p9), [#allocation3], %s4147_s14 }
  0xd1   : > { %3748 = dma.done.wait (%p4639_p7), %s741_s15, 16  }
  0xd2   : > { %3750 = vsyncadd (%p4639_p7), %s741_s15, 4294967280  ;;  %p4640_p12 = scmp.eq.s32.totalorder %s3962_s23, 0 }
  0xd4   : > { %3752 = dma.done.wait (%p4640_p12), [#allocation7], 32   ;;  %p4641_p6 = pmov %p4640_p12 }
  0xd6   : > { %3754 = vsyncadd (%p4641_p6), [#allocation7], 4294967264  ;;  %p4642_p5 = pmov %p4641_p6 }
  0xd8   : > { %3756 = dma.done.wait (%p4642_p5), [#allocation10], 32   ;;  %p4643_p2 = pmov %p4642_p5 }
  0xda   : > { %3758 = vsyncadd (%p4643_p2), [#allocation10], 4294967264  ;;  %p4644_p10 = pmov %p4643_p2 }
  0xdb   : > { %p4645_p11 = pmov %p4643_p2 }
  0xdc   : > { %3760 = dma.done.wait (%p4644_p10), [#allocation13], 32  }
  0xdd   : > { %3762 = vsyncadd (%p4645_p11), [#allocation13], 4294967264  ;;  %p4646_p1 = pmov %p4643_p2 }
  0xdf   : > { %3764 = dma.done.wait (%p4646_p1), [#allocation16], 272   ;;  %p4647_p3 = pmov %p4646_p1 }
  0xe0   : > { %p4648_p13 = pmov %p4646_p1 }
  0xe1   : > { %3766 = vsyncadd (%p4647_p3), [#allocation16], 4294967024 }
  0xe2   : > { %3768 = dma.done.wait (%p4648_p13), [#allocation19], 272   ;;  %p4649_p0 = pmov %p4646_p1 }
  0xe4   : > { %3770 = vsyncadd (%p4649_p0), [#allocation19], 4294967024  ;;  %p4650_p4 = pmov %p4649_p0 }
  0xe5   : > { %p4651_p8 = pmov %p4649_p0 }
  0xe6   : > { %3772 = dma.done.wait (%p4650_p4), [#allocation22], 16  }
  0xe7   : > { %3774 = vsyncadd (%p4651_p8), [#allocation22], 4294967280  ;;  %p851_p9 = scmp.lt.s32.totalorder %s3962_s23, 1  ;;  %s4652_s27 = sld [smem:[#allocation34_spill]]  ;;  %vm861_vm0 = vcmask 261120   ;;  %v3809_v8 = vmov 0.0   ;;  %v957_v58 = vlaneseq }
  0xe8   : > { %s4653_s8 = sld [smem:[#allocation39_spill]]  ;;  %2962 = vmatprep.subr.bf16.mxu0 %v3809_v8  ;;  %vm3810_vm1 = vmmov 0   ;;  %2982 = vmatprep.subr.bf16.mxu1 %v3809_v8  ;;  %v2839_v14 = vld [vmem:[#allocation9] ss:$0 sm:$0xff]  ;;  %v2840_v16 = vld [vmem:[#allocation11] ss:$0 sm:$0xff] }
  0xe9   : > { %s852_s9 = scalar_select %p851_p9, %s3962_s23, 1  ;;  %2966 = vmatprep.mubr.msk.bf16.mxu0 %vm3810_vm1, %v3809_v8  ;;  %2984 = vmatprep.mubr.msk.bf16.mxu1 %vm3810_vm1, %v3809_v8  ;;  %vm974_vm2 = vcmask 64512   ;;  %vm1042_vm3 = vcmask 1043456   ;;  %v4257_v61 = vshrl.u32 %v957_v58, 7  ;;  %vm1434_vm6 = vcmask 785920  }
  0xea   : > { %s3811_s6 = smov 96   ;;  %s3812_s20 = smov 120   ;;  %vm1463_vm7 = vcmask 130112   ;;  %vm1476_vm8 = vcmask 195712   ;;  %vm1489_vm9 = vcmask 261312  }
  0xeb   : > { %s2838_s13 = sshll.u32 %s852_s9, 3  ;;  %s3813_s15 = smov 88  }
  0xec   : > { %s3814_s9 = smov 80   ;;  %s3816_s17 = smov 72  }
  0xed   : > { %s854_s25 = scalar_lea.vmem %s4652_s27, %s2838_s13  ;;  %s3815_s13 = smov 112  }
  0xee   : > { %v4184_v0 = vld [vmem:[%s854_s25] sm:$0xff]  ;;  %v3309_v7 = vld [vmem:[%s4653_s8 + $0x8] sm:$0xff]   ;;  %s3817_s1 = smov 104   ;;  %s3818_s27 = smov 64  }
  0xef   : > { %v4188_v1 = vsel %vm861_vm0, %v4184_v0, 0.0  ;;  %2963 = vmatpush3.bf16.msra.mxu0 %v3309_v7  ;;  %v3310_v9 = vld [vmem:[%s4653_s8] sm:$0xff]   ;;  %s3819_s25 = smov 56   ;;  %s3820_s5 = smov 48  }
  0xf0   : > { %863 = vadd.xlane.f32.xlu0 %v4188_v1  ;;  %2964 = vmatprep.subr.bf16.mxu0 %v3809_v8  ;;  %s3821_s4 = smov 40   ;;  %v4266_v7 = vld [vmem:[%s743_s16] sm:$0x1]  ;;  %s3822_s16 = smov 8  }
  0xf1   : > { %s4654_s7 = sld [smem:[#allocation40_spill]]  ;;  %p4658_p12 = scmp.ne.s32.totalorder %s4634_s2, 0 }
  0xf2   : > { %s4655_s0 = sld [smem:[#allocation48_spill]]  ;;  %s3825_s22 = smov [#allocation23]  }
  0xf3   : > { %2965 = vmatpush3.bf16.msra.mxu0 %v3310_v9  ;;  %v960_v9 = vand.u32 127, %v957_v58 }
  0xf4   : > { %2970 = vmatprep.subr.bf16.mxu0 %v3809_v8 }
  0xf5   : > { %vm962_vm4 = vcmp.eq.s32.totalorder %v960_v9, %v4257_v61  ;;  %vm961_vm5 = vcmp.le.s32.totalorder %v960_v9, %v4257_v61 }
 0x179   : > { %v864_v2 = vpop.xlane.xlu0 %863 }
 0x17a   : > { %v866_v3 = vmul.f32 0.03125, %v864_v2 }
 0x17c   : > { %v867_v4 = vsub.f32 %v4184_v0, %v866_v3 }
 0x17e   : > { %v868_v5 = vmul.f32 %v867_v4, %v867_v4 }
 0x180   : > { %v869_v6 = vsel %vm861_vm0, %v868_v5, 0.0  ;;  %v966_v5 = vsub.s32 0, %v4257_v61 }
 0x181   : > { %870 = vadd.xlane.f32.xlu0 %v869_v6 }
 0x20a   : > { %v871_v10 = vpop.xlane.xlu0 %870 }
 0x20b   : > { %v872_v11 = vmul.f32 0.03125, %v871_v10  ;;  %v967_v10 = vrot.slane %v4266_v7, %v966_v5 }
 0x20d   : > { %v873_v12 = vadd.f32 1e-05, %v872_v11  ;;  %v969_v11 = vsel %vm962_vm4, 1.0, %v967_v10 }
 0x20f   : > { %3331 = vrsqrt.f32 %v873_v12  ;;  %v970_v12 = vsel %vm961_vm5, %v969_v11, 0.0 }
 0x21c   : > { %v3332_v13 = vpop.eup %3331 }
 0x21d   : > { %v875_v15 = vmul.f32 %v3332_v13, %v867_v4 }
 0x21f   : > { %v882_v17 = vmul.f32 %v2839_v14, %v875_v15 }
 0x221   : > { %v889_v18 = vadd.f32 %v2840_v16, %v882_v17 }
 0x223   : > { %v890_v19 = vpack.c.bf16 %v889_v18, %v889_v18 }
 0x225   : > { %2967 = vmatmul.mubr.msk.bf16.vlgmr.msra.gmra.mxu0 %vm861_vm0, %v890_v19 }
 0x226   : > { %2972 = vmatprep.mubr.msk.bf16.mxu0 %vm3810_vm1, %v3809_v8 }
 0x2e5   : > { %v944_v20 = vpop.f32.mrf.mxu0 }
 0x2e6   : > { %v950_v21 = vmul.f32 0.35355338, %v944_v20  ;;  %v4210_v22 = vpack.c.bf16 %v944_v20, %v944_v20 }
 0x2e7   : > { %v2968_v23 = vpop.f32.mrf.mxu0 }
 0x2e8   : > { %v951_v24 = vpack.c.bf16 %v950_v21, %v950_v21  ;;  %972 = vrot.lane.b32.xlu1 %v4210_v22, %s3811_s6 }
 0x2e9   : > { %v947_v25 = vpop.f32.mrf.mxu0 }
 0x2ea   : > { %1088 = vrot.lane.b32.xlu0 %v951_v24, %s3812_s20 }
 0x2eb   : > { %v2969_v26 = vpop.f32.mrf.mxu0 }
 0x2ec   : > { %1090 = vrot.lane.b32.xlu1 %v4210_v22, %s3813_s15  ;;  %v1433_v26 = vunpack.c.l.bf16 %v4210_v22 }
 0x2f0   : > { %1205 = vrot.lane.b32.xlu1 %v4210_v22, %s3814_s9  ;;  %s3823_s9 = smov 16  }
 0x2f4   : > { %1203 = vrot.lane.b32.xlu1 %v951_v24, %s3815_s13 }
 0x2f8   : > { %1320 = vrot.lane.b32.xlu1 %v4210_v22, %s3816_s17  ;;  %s3824_s17 = smov 24  }
 0x2fc   : > { %1318 = vrot.lane.b32.xlu1 %v951_v24, %s3817_s1 }
 0x35a   : > { %v973_v27 = vpop.permute.xlu1 %972 }
 0x35b   : > { %v979_v28 = vsel %vm974_vm2, %v973_v27, 0  ;;  %v1435_v27 = vsel %vm1434_vm6, %v1433_v26, 0.0 }
 0x35c   : > { %2971 = vmatpush3.bf16.xpose.msra.mxu0 %v979_v28  ;;  %v1089_v32 = vpop.permute.xlu0 %1088 }
 0x35d   : > { %2976 = vmatprep.subr.bf16.mxu0 %v3809_v8 }
 0x35e   : > { %v1091_v29 = vpop.permute.xlu1 %1090 }
 0x35f   : > { %v1096_v30 = vsel %vm974_vm2, %v1091_v29, 0  ;;  %v1436_v29 = vrot.slane %v1435_v27, 4 }
 0x360   : > { %2983 = vmatpush3.bf16.xpose.msra.mxu1 %v1096_v30 }
 0x361   : > { %2994 = vmatprep.subr.bf16.mxu1 %v3809_v8 }
 0x362   : > { %v1206_v31 = vpop.permute.xlu1 %1205 }
 0x363   : > { %2973 = vmatmul.mubr.msk.bf16.vlgmr.msra.gmra.mxu0 %vm974_vm2, %v951_v24  ;;  %v1211_v34 = vsel %vm974_vm2, %v1206_v31, 0 }
 0x364   : > { %2978 = vmatprep.mubr.msk.bf16.mxu0 %vm3810_vm1, %v3809_v8 }
 0x366   : > { %v1204_v33 = vpop.permute.xlu1 %1203 }
 0x367   : > { %2985 = vmatmul.mubr.msk.bf16.vlgmr.msra.gmra.mxu1 %vm974_vm2, %v1089_v32  ;;  %v1437_v32 = vadd.f32 %v1436_v29, %v1435_v27 }
 0x368   : > { %2995 = vmatpush3.bf16.xpose.msra.mxu1 %v1211_v34  ;;  %2996 = vmatprep.mubr.msk.bf16.mxu1 %vm3810_vm1, %v3809_v8 }
 0x369   : > { %3006 = vmatprep.subr.bf16.mxu1 %v3809_v8 }
 0x36a   : > { %v1321_v35 = vpop.permute.xlu1 %1320 }
 0x36b   : > { %v1326_v36 = vsel %vm974_vm2, %v1321_v35, 0 }
 0x36e   : > { %v1319_v37 = vpop.permute.xlu1 %1318 }
 0x36f   : > { %2997 = vmatmul.mubr.msk.bf16.vlgmr.msra.gmra.mxu1 %vm974_vm2, %v1204_v33  ;;  %v1438_v33 = vrot.slane %v1437_v32, 2 }
 0x370   : > { %3007 = vmatpush3.bf16.xpose.msra.mxu1 %v1326_v36  ;;  %3008 = vmatprep.mubr.msk.bf16.mxu1 %vm3810_vm1, %v3809_v8 }
 0x371   : > { %3018 = vmatprep.subr.bf16.mxu1 %v3809_v8  ;;  %v1439_v34 = vadd.f32 %v1438_v33, %v1437_v32 }
 0x377   : > { %3009 = vmatmul.mubr.msk.bf16.vlgmr.msra.gmra.mxu1 %vm974_vm2, %v1319_v37  ;;  %v1440_v37 = vrot.slane %v1439_v34, 1 }
 0x378   : > { %3022 = vmatprep.mubr.msk.bf16.mxu1 %vm3810_vm1, %v3809_v8 }
 0x423   : > { %v1015_v38 = vpop.f32.mrf.mxu0 }
 0x424   : > { %v1021_v39 = vsel %vm974_vm2, %v1015_v38, -inf }
 0x425   : > { %1022 = vmax.xlane.f32.xlu1 %v1021_v39  ;;  %v2974_v40 = vpop.f32.mrf.mxu0 }
 0x426   : > { %v1441_v40 = vadd.f32 %v1440_v37, %v1439_v34 }
 0x427   : > { %v1018_v41 = vpop.f32.mrf.mxu0  ;;  %v1132_v42 = vpop.f32.mrf.mxu1 }
 0x428   : > { %v1138_v43 = vsel %vm974_vm2, %v1132_v42, -inf  ;;  %v1444_v41 = vmul.f32 1.25e-07, %v1441_v40 }
 0x429   : > { %1139 = vmax.xlane.f32.xlu0 %v1138_v43  ;;  %v2975_v44 = vpop.f32.mrf.mxu0  ;;  %v2986_v45 = vpop.f32.mrf.mxu1 }
 0x42b   : > { %v1135_v46 = vpop.f32.mrf.mxu1 }
 0x42d   : > { %v2987_v47 = vpop.f32.mrf.mxu1 }
 0x42f   : > { %v4241_v48 = vpop.f32.mrf.mxu1 }
 0x430   : > { %v1253_v57 = vsel %vm974_vm2, %v4241_v48, -inf }
 0x431   : > { %v2998_v49 = vpop.f32.mrf.mxu1 }
 0x433   : > { %v1250_v50 = vpop.f32.mrf.mxu1 }
 0x435   : > { %v2999_v51 = vpop.f32.mrf.mxu1 }
 0x436   : > { %1037 = vrot.lane.b32.xlu1 %v4210_v22, %s3818_s27 }
 0x437   : > { %v1362_v52 = vpop.f32.mrf.mxu1 }
 0x438   : > { %v1368_v53 = vsel %vm974_vm2, %v1362_v52, -inf }
 0x439   : > { %1369 = vmax.xlane.f32.xlu0 %v1368_v53  ;;  %v3010_v54 = vpop.f32.mrf.mxu1 }
 0x43b   : > { %v1365_v55 = vpop.f32.mrf.mxu1 }
 0x43d   : > { %v3011_v56 = vpop.f32.mrf.mxu1 }
 0x44f   : > { %1154 = vrot.lane.b32.xlu0 %v4210_v22, %s3819_s25 }
 0x45a   : > { %1254 = vmax.xlane.f32.xlu1 %v1253_v57 }
 0x46b   : > { %1269 = vrot.lane.b32.xlu1 %v4210_v22, %s3820_s5 }
 0x46f   : > { %1384 = vrot.lane.b32.xlu1 %v4210_v22, %s3821_s4 }
 0x4ae   : > { %v4254_v59 = vpop.xlane.xlu1 %1022 }
 0x4af   : > { %v1027_v60 = vsub.f32 %v1015_v38, %v4254_v59  ;;  %v1024_v56 = vsub.f32 -inf, %v4254_v59 }
 0x4b1   : > { %v1028_v62 = vmul.f32 1.442695, %v1027_v60  ;;  %v1025_v58 = vmul.f32 1.442695, %v1024_v56 }
 0x4b2   : > { %v4259_v63 = vpop.xlane.xlu0 %1139  ;;  %v1038_v2 = vpop.permute.xlu1 %1037 }
 0x4b3   : > { %v1144_v3 = vsub.f32 %v1132_v42, %v4259_v63  ;;  %v1044_v4 = vsel %vm1042_vm3, %v1038_v2, 0  ;;  %3333 = vpow2.f32 %v1028_v62  ;;  %v1141_v50 = vsub.f32 -inf, %v4259_v63 }
 0x4b4   : > { %2977 = vmatpush3.bf16.msra.mxu0 %v1044_v4 }
 0x4b5   : > { %v1145_v6 = vmul.f32 1.442695, %v1144_v3  ;;  %2988 = vmatprep.subr.bf16.mxu0 %v3809_v8  ;;  %v1142_v51 = vmul.f32 1.442695, %v1141_v50 }
 0x4b7   : > { %3335 = vpow2.f32 %v1145_v6 }
 0x4c0   : > { %v3334_v13 = vpop.eup %3333 }
 0x4c1   : > { %v1030_v15 = vmul.f32 %v3334_v13, %v970_v12 }
 0x4c2   : > { %v4274_v14 = vpop.xlane.xlu0 %1369 }
 0x4c3   : > { %v1374_v16 = vsub.f32 %v1362_v52, %v4274_v14  ;;  %v1036_v17 = vpack.c.bf16 %v1030_v15, %v1030_v15  ;;  %v1032_v49 = vsel %vm974_vm2, %v1030_v15, 0.0 }
 0x4c4   : > { %v3336_v18 = vpop.eup %3335 }
 0x4c5   : > { %v1375_v19 = vmul.f32 1.442695, %v1374_v16  ;;  %2979 = vmatmul.mubr.msk.bf16.vlgmr.msra.gmra.mxu0 %vm974_vm2, %v1036_v17  ;;  %v1147_v21 = vmul.f32 %v3336_v18, %v970_v12 }
 0x4c6   : > { %v1155_v20 = vpop.permute.xlu0 %1154  ;;  %2990 = vmatprep.mubr.msk.bf16.mxu0 %vm3810_vm1, %v3809_v8 }
 0x4c7   : > { %v1160_v23 = vsel %vm1042_vm3, %v1155_v20, 0  ;;  %3337 = vpow2.f32 %v1375_v19  ;;  %v1149_v24 = vsel %vm974_vm2, %v1147_v21, 0.0  ;;  %v1153_v25 = vpack.c.bf16 %v1147_v21, %v1147_v21 }
 0x4c8   : > { %2989 = vmatpush3.bf16.msra.mxu0 %v1160_v23  ;;  %1150 = vadd.xlane.f32.xlu0 %v1149_v24  ;;  %v1371_v23 = vsub.f32 -inf, %v4274_v14 }
 0x4c9   : > { %3000 = vmatprep.subr.bf16.mxu0 %v3809_v8 }
 0x4ca   : > { %v1372_v27 = vmul.f32 1.442695, %v1371_v23 }
 0x4cd   : > { %2991 = vmatmul.mubr.msk.bf16.vlgmr.msra.gmra.mxu0 %vm974_vm2, %v1153_v25 }
 0x4ce   : > { %3002 = vmatprep.mubr.msk.bf16.mxu0 %vm3810_vm1, %v3809_v8 }
 0x4d4   : > { %v3338_v28 = vpop.eup %3337 }
 0x4d5   : > { %v1377_v30 = vmul.f32 %v3338_v28, %v970_v12 }
 0x4d7   : > { %v1379_v31 = vsel %vm974_vm2, %v1377_v30, 0.0 }
 0x4d8   : > { %1380 = vadd.xlane.f32.xlu0 %v1379_v31 }
 0x4e3   : > { %v1255_v35 = vpop.xlane.xlu1 %1254 }
 0x4e4   : > { %v1259_v36 = vsub.f32 %v4241_v48, %v1255_v35  ;;  %v1383_v48 = vpack.c.bf16 %v1377_v30, %v1377_v30  ;;  %v1256_v63 = vsub.f32 -inf, %v1255_v35 }
 0x4e6   : > { %v1260_v38 = vmul.f32 1.442695, %v1259_v36  ;;  %v1257_v18 = vmul.f32 1.442695, %v1256_v63 }
 0x4e7   : > { %v1270_v22 = vpop.permute.xlu1 %1269 }
 0x4e8   : > { %v1275_v39 = vsel %vm1042_vm3, %v1270_v22, 0  ;;  %3339 = vpow2.f32 %v1260_v38 }
 0x4e9   : > { %3001 = vmatpush3.bf16.msra.mxu0 %v1275_v39  ;;  %3341 = vpow2.f32 %v1142_v51 }
 0x4ea   : > { %3012 = vmatprep.subr.bf16.mxu0 %v3809_v8 }
 0x4eb   : > { %v1385_v44 = vpop.permute.xlu1 %1384 }
 0x4ec   : > { %v1390_v47 = vsel %vm1042_vm3, %v1385_v44, 0 }
 0x4ee   : > { %1454 = vrot.lane.b32.xlu0 %v1444_v41, %s3819_s25  ;;  %s2897_s25 = sshll.u32 %s3962_s23, 7 }
 0x4f5   : > { %v3340_v42 = vpop.eup %3339 }
 0x4f6   : > { %v1262_v43 = vmul.f32 %v3340_v42, %v970_v12  ;;  %v3342_v52 = vpop.eup %3341 }
 0x4f7   : > { %v1148_v54 = vmul.f32 0.0, %v3342_v52 }
 0x4f8   : > { %v1264_v45 = vsel %vm974_vm2, %v1262_v43, 0.0  ;;  %v1268_v46 = vpack.c.bf16 %v1262_v43, %v1262_v43  ;;  %v3311_v43 = vld [vmem:[%s4654_s7 + $0x8] sm:$0xff]  }
 0x4f9   : > { %1265 = vadd.xlane.f32.xlu1 %v1264_v45  ;;  %3019 = vmatpush3.bf16.msra.mxu1 %v3311_v43 }
 0x4fa   : > { %3003 = vmatmul.mubr.msk.bf16.vlgmr.msra.gmra.mxu0 %vm974_vm2, %v1268_v46  ;;  %3020 = vmatprep.subr.bf16.mxu1 %v3809_v8 }
 0x4fb   : > { %3013 = vmatpush3.bf16.msra.mxu0 %v1390_v47  ;;  %3014 = vmatprep.mubr.msk.bf16.mxu0 %vm3810_vm1, %v3809_v8  ;;  %v3312_v47 = vld [vmem:[%s4654_s7] sm:$0xff]   ;;  %s2613_s7 = scalar_lea.sflag [#allocation5], %s4147_s14 }
 0x4fc   : > { %3026 = vmatprep.subr.bf16.mxu0 %v3809_v8 }
 0x4fd   : > { %3021 = vmatpush3.bf16.msra.mxu1 %v3312_v47 }
 0x4fe   : > { %3034 = vmatprep.subr.bf16.mxu1 %v3809_v8 }
 0x502   : > { %3015 = vmatmul.mubr.msk.bf16.vlgmr.msra.gmra.mxu0 %vm974_vm2, %v1383_v48 }
 0x503   : > { %3030 = vmatprep.mubr.msk.bf16.mxu0 %vm3810_vm1, %v3809_v8 }
 0x50a   : > { %1467 = vrot.lane.b32.xlu1 %v1444_v41, %s3820_s5 }
 0x50d   : > { %1033 = vadd.xlane.f32.xlu0 %v1032_v49 }
 0x50e   : > { %1480 = vrot.lane.b32.xlu1 %v1444_v41, %s3821_s4 }
 0x512   : > { %1446 = vrot.lane.b32.xlu1 %v1444_v41, %s3818_s27  ;;  %s4656_s27 = sld [smem:[#allocation49_spill]] }
 0x551   : > { %v1151_v53 = vpop.xlane.xlu0 %1150 }
 0x552   : > { %v1152_v55 = vadd.f32 %v1151_v53, %v1148_v54 }
 0x554   : > { %v1452_v57 = vadd.f32 1e-06, %v1152_v55 }
 0x556   : > { %3343 = vrcp.f32 %v1452_v57 }
 0x557   : > { %3345 = vpow2.f32 %v1025_v58 }
 0x558   : > { %3347 = vpow2.f32 %v1257_v18 }
 0x561   : > { %v1381_v2 = vpop.xlane.xlu0 %1380 }
 0x563   : > { %v3344_v13 = vpop.eup %3343 }
 0x564   : > { %v3346_v16 = vpop.eup %3345 }
 0x565   : > { %v1455_v10 = vpop.permute.xlu0 %1454  ;;  %v1031_v20 = vmul.f32 0.0, %v3346_v16  ;;  %v3348_v29 = vpop.eup %3347 }
 0x566   : > { %v1263_v32 = vmul.f32 0.0, %v3348_v29  ;;  %v2861_v29 = vld [vmem:[#allocation8] ss:$0 sm:$0xff] }
 0x582   : > { %v1266_v17 = vpop.xlane.xlu1 %1265 }
 0x583   : > { %v1267_v35 = vadd.f32 %v1266_v17, %v1263_v32  ;;  %v3313_v17 = vld [vmem:[%s4576_s11 + $0x8] sm:$0xff]  }
 0x585   : > { %v1080_v60 = vpop.f32.mrf.mxu0  ;;  %v1465_v14 = vadd.f32 1e-06, %v1267_v35 }
 0x586   : > { %v1468_v25 = vpop.permute.xlu1 %1467  ;;  %v1086_v31 = vadd.f32 %v1080_v60, %v1031_v20 }
 0x587   : > { %v2980_v62 = vpop.f32.mrf.mxu0 }
 0x589   : > { %v1083_v3 = vpop.f32.mrf.mxu0 }
 0x58a   : > { %v1481_v28 = vpop.permute.xlu1 %1480 }
 0x58b   : > { %v2981_v4 = vpop.f32.mrf.mxu0 }
 0x58d   : > { %v1196_v6 = vpop.f32.mrf.mxu0 }
 0x58e   : > { %v1202_v9 = vadd.f32 %v1196_v6, %v1148_v54  ;;  %v1447_v30 = vpop.permute.xlu1 %1446 }
 0x58f   : > { %v2992_v11 = vpop.f32.mrf.mxu0  ;;  %v1449_v33 = vadd.f32 %v1447_v30, %v1086_v31 }
 0x590   : > { %v1457_v12 = vadd.f32 %v1455_v10, %v1202_v9 }
 0x591   : > { %v1199_v15 = vpop.f32.mrf.mxu0 }
 0x592   : > { %v1458_v59 = vmul.f32 %v3344_v13, %v1457_v12 }
 0x593   : > { %v2993_v19 = vpop.f32.mrf.mxu0 }
 0x594   : > { %1460 = vrot.lane.b32.xlu1 %v1458_v59, %s3822_s16 }
 0x596   : > { %v1034_v21 = vpop.xlane.xlu0 %1033 }
 0x597   : > { %v1035_v24 = vadd.f32 %v1034_v21, %v1031_v20 }
 0x599   : > { %v1442_v26 = vadd.f32 1e-06, %v1035_v24 }
 0x59b   : > { %3349 = vrcp.f32 %v1442_v26 }
 0x59c   : > { %3351 = vpow2.f32 %v1372_v27  ;;  %v2860_v27 = vld [vmem:[#allocation6] ss:$0 sm:$0xff] }
 0x59d   : > { %3353 = vrcp.f32 %v1465_v14 }
 0x5a8   : > { %v3350_v34 = vpop.eup %3349 }
 0x5a9   : > { %v1450_v36 = vmul.f32 %v3350_v34, %v1449_v33  ;;  %v3352_v37 = vpop.eup %3351  ;;  %v3315_v33 = vld [vmem:[%s4575_s10 + $0x8] sm:$0xff]   ;;  %v3316_v34 = vld [vmem:[%s4575_s10] sm:$0xff]  }
 0x5aa   : > { %v1378_v38 = vmul.f32 0.0, %v3352_v37  ;;  %v3354_v45 = vpop.eup %3353  ;;  %3027 = vmatpush3.bf16.msra.mxu0 %v3315_v33 }
 0x5ab   : > { %1451 = vst.msk [vmem:[#allocation2] sm:$0xff] %vm974_vm2, %v1450_v36  ;;  %3028 = vmatprep.subr.bf16.mxu0 %v3809_v8 }
 0x5ac   : > { %v1382_v22 = vadd.f32 %v1381_v2, %v1378_v38 }
 0x5ae   : > { %v1478_v39 = vadd.f32 1e-06, %v1382_v22  ;;  %3029 = vmatpush3.bf16.msra.mxu0 %v3316_v34 }
 0x5af   : > { %3042 = vmatprep.subr.bf16.mxu0 %v3809_v8 }
 0x5b0   : > { %3355 = vrcp.f32 %v1478_v39  ;;  %v2856_v39 = vld [vmem:[#allocation14] ss:$0 sm:$0xff] }
 0x5ba   : > { %v1311_v40 = vpop.f32.mrf.mxu0 }
 0x5bb   : > { %v1317_v41 = vadd.f32 %v1311_v40, %v1263_v32 }
 0x5bc   : > { %v3004_v42 = vpop.f32.mrf.mxu0 }
 0x5bd   : > { %v1470_v44 = vadd.f32 %v1468_v25, %v1317_v41  ;;  %v3356_v54 = vpop.eup %3355  ;;  %v3317_v42 = vld [vmem:[%s4577_s12 + $0x8] sm:$0xff]  }
 0x5be   : > { %v1314_v46 = vpop.f32.mrf.mxu0 }
 0x5bf   : > { %v1471_v48 = vmul.f32 %v3354_v45, %v1470_v44  ;;  %v3318_v44 = vld [vmem:[%s4577_s12] sm:$0xff]  }
 0x5c0   : > { %v3005_v49 = vpop.f32.mrf.mxu0 }
 0x5c1   : > { %1473 = vrot.lane.b32.xlu1 %v1471_v48, %s3823_s9 }
 0x5c2   : > { %v1426_v50 = vpop.f32.mrf.mxu0 }
 0x5c3   : > { %v1432_v51 = vadd.f32 %v1426_v50, %v1378_v38  ;;  %v2855_v38 = vld [vmem:[#allocation12] ss:$0 sm:$0xff] }
 0x5c4   : > { %v3016_v52 = vpop.f32.mrf.mxu0 }
 0x5c5   : > { %v1483_v53 = vadd.f32 %v1481_v28, %v1432_v51 }
 0x5c6   : > { %v1429_v55 = vpop.f32.mrf.mxu0 }
 0x5c7   : > { %v1484_v56 = vmul.f32 %v3356_v54, %v1483_v53 }
 0x5c8   : > { %v3017_v57 = vpop.f32.mrf.mxu0 }
 0x5c9   : > { %1486 = vrot.lane.b32.xlu1 %v1484_v56, %s3824_s17 }
 0x5ed   : > { %1644 = vadd.xlane.f32.xlu1 %v4188_v1 }
 0x606   : > { %v1461_v58 = vpop.permute.xlu1 %1460 }
 0x607   : > { %1464 = vst.msk [vmem:[#allocation2] sm:$0xff] %vm1463_vm7, %v1461_v58 }
 0x633   : > { %v1474_v60 = vpop.permute.xlu1 %1473 }
 0x634   : > { %1477 = vst.msk [vmem:[#allocation2] sm:$0xff] %vm1476_vm8, %v1474_v60 }
 0x63b   : > { %v1487_v62 = vpop.permute.xlu1 %1486 }
 0x63c   : > { %1490 = vst.msk [vmem:[#allocation2] sm:$0xff] %vm1489_vm9, %v1487_v62 }
 0x643   : > { %v1491_v2 = vld [vmem:[#allocation2] sm:$0xff] }
 0x644   : > { %v1492_v3 = vpack.c.bf16 %v1491_v2, %v1491_v2 }
 0x646   : > { %3023 = vmatmul.mubr.msk.bf16.vlgmr.msra.gmra.mxu1 %vm861_vm0, %v1492_v3 }
 0x647   : > { %3038 = vmatprep.mubr.msk.bf16.mxu1 %vm3810_vm1, %v3809_v8  ;;  %3035 = vmatpush3.bf16.msra.mxu1 %v3313_v17 }
 0x648   : > { %3036 = vmatprep.subr.bf16.mxu1 %v3809_v8 }
 0x676   : > { %v1645_v1 = vpop.xlane.xlu1 %1644 }
 0x677   : > { %v1646_v4 = vmul.f32 0.03125, %v1645_v1 }
 0x679   : > { %v1647_v6 = vsub.f32 %v4184_v0, %v1646_v4 }
 0x67b   : > { %v1648_v10 = vmul.f32 %v1647_v6, %v1647_v6 }
 0x67d   : > { %v1649_v15 = vsel %vm861_vm0, %v1648_v10, 0.0 }
 0x706   : > { %v1542_v9 = vpop.f32.mrf.mxu1 }
 0x707   : > { %v4329_v63 = vadd.f32 %v1542_v9, %v4184_v0  ;;  %v3314_v0 = vld [vmem:[%s4576_s11] sm:$0xff]  }
 0x708   : > { %v3024_v11 = vpop.f32.mrf.mxu1  ;;  %3037 = vmatpush3.bf16.msra.mxu1 %v3314_v0 }
 0x709   : > { %v1551_v12 = vsel %vm861_vm0, %v4329_v63, 0.0  ;;  %3050 = vmatprep.subr.bf16.mxu1 %v3809_v8 }
 0x70a   : > { %1552 = vadd.xlane.f32.xlu0 %v1551_v12  ;;  %v1545_v13 = vpop.f32.mrf.mxu1 }
 0x70c   : > { %v3025_v16 = vpop.f32.mrf.mxu1 }
 0x70e   : > { %1650 = vadd.xlane.f32.xlu0 %v1649_v15 }
 0x793   : > { %v1553_v59 = vpop.xlane.xlu0 %1552 }
 0x794   : > { %v1554_v18 = vmul.f32 0.03125, %v1553_v59 }
 0x796   : > { %v1555_v19 = vsub.f32 %v4329_v63, %v1554_v18 }
 0x797   : > { %v1651_v20 = vpop.xlane.xlu0 %1650 }
 0x798   : > { %v1652_v21 = vmul.f32 0.03125, %v1651_v20  ;;  %v1556_v23 = vmul.f32 %v1555_v19, %v1555_v19 }
 0x79a   : > { %v1653_v24 = vadd.f32 1e-05, %v1652_v21  ;;  %v1557_v25 = vsel %vm861_vm0, %v1556_v23, 0.0 }
 0x79b   : > { %1558 = vadd.xlane.f32.xlu0 %v1557_v25 }
 0x79c   : > { %3357 = vrsqrt.f32 %v1653_v24 }
 0x7a9   : > { %v3358_v26 = vpop.eup %3357 }
 0x7aa   : > { %v1655_v28 = vmul.f32 %v3358_v26, %v1647_v6 }
 0x7ac   : > { %v1662_v30 = vmul.f32 %v2860_v27, %v1655_v28 }
 0x7ae   : > { %v1669_v31 = vadd.f32 %v2861_v29, %v1662_v30 }
 0x7b0   : > { %v1670_v32 = vpack.c.bf16 %v1669_v31, %v1669_v31 }
 0x7b2   : > { %3039 = vmatmul.mubr.msk.bf16.vlgmr.msra.gmra.mxu1 %vm861_vm0, %v1670_v32 }
 0x7b3   : > { %3052 = vmatprep.mubr.msk.bf16.mxu1 %vm3810_vm1, %v3809_v8 }
 0x824   : > { %v1559_v35 = vpop.xlane.xlu0 %1558 }
 0x825   : > { %v1560_v36 = vmul.f32 0.03125, %v1559_v35 }
 0x827   : > { %v1561_v37 = vadd.f32 1e-05, %v1560_v36 }
 0x829   : > { %3359 = vrsqrt.f32 %v1561_v37 }
 0x836   : > { %v3360_v14 = vpop.eup %3359 }
 0x837   : > { %v1563_v22 = vmul.f32 %v3360_v14, %v1555_v19  ;;  %v858_v14 = vsub.f32 1.0, %v4266_v7 }
 0x839   : > { %v1570_v40 = vmul.f32 %v2855_v38, %v1563_v22  ;;  %v1796_v38 = vrot.slane %v858_v14, %v966_v5 }
 0x83b   : > { %v1577_v41 = vadd.f32 %v2856_v39, %v1570_v40 }
 0x83d   : > { %v1578_v43 = vpack.c.bf16 %v1577_v41, %v1577_v41 }
 0x83f   : > { %3031 = vmatmul.mubr.msk.bf16.vlgmr.msra.gmra.mxu0 %vm861_vm0, %v1578_v43 }
 0x840   : > { %3043 = vmatpush3.bf16.msra.mxu0 %v3317_v42  ;;  %3046 = vmatprep.mubr.msk.bf16.mxu0 %vm3810_vm1, %v3809_v8 }
 0x841   : > { %3044 = vmatprep.subr.bf16.mxu0 %v3809_v8 }
 0x844   : > { %3045 = vmatpush3.bf16.msra.mxu0 %v3318_v44 }
 0x845   : > { %3056 = vmatprep.subr.bf16.mxu0 %v3809_v8 }
 0x847   : > { %3047 = vmatmul.mubr.msk.bf16.vlgmr.msra.gmra.mxu0 %vm861_vm0, %v1670_v32 }
 0x848   : > { %3058 = vmatprep.mubr.msk.bf16.mxu0 %vm3810_vm1, %v3809_v8 }
 0x872   : > { %v1724_v45 = vpop.f32.mrf.mxu1 }
 0x873   : > { %v1730_v46 = vpack.c.bf16 %v1724_v45, %v1724_v45 }
 0x874   : > { %v3040_v47 = vpop.f32.mrf.mxu1 }
 0x875   : > { %1911 = vrot.lane.b32.xlu0 %v1730_v46, %s3812_s20  ;;  %v1802_v48 = vsel %vm974_vm2, %v1730_v46, 0 }
 0x876   : > { %v1727_v49 = vpop.f32.mrf.mxu1  ;;  %3051 = vmatpush3.bf16.xpose.msra.mxu1 %v1802_v48 }
 0x877   : > { %3062 = vmatprep.subr.bf16.mxu1 %v3809_v8 }
 0x878   : > { %v3041_v50 = vpop.f32.mrf.mxu1 }
 0x879   : > { %2027 = vrot.lane.b32.xlu0 %v1730_v46, %s3815_s13 }
 0x8e7   : > { %v1912_v54 = vpop.permute.xlu0 %1911 }
 0x8e8   : > { %v1917_v57 = vsel %vm974_vm2, %v1912_v54, 0 }
 0x8eb   : > { %v2028_v6 = vpop.permute.xlu0 %2027 }
 0x8ec   : > { %v2033_v10 = vsel %vm974_vm2, %v2028_v6, 0 }
 0x8ff   : > { %v1632_v51 = vpop.f32.mrf.mxu0 }
 0x900   : > { %v1638_v52 = vmul.f32 0.35355338, %v1632_v51 }
 0x901   : > { %v3032_v53 = vpop.f32.mrf.mxu0 }
 0x902   : > { %v1639_v55 = vpack.c.bf16 %v1638_v52, %v1638_v52 }
 0x903   : > { %v1635_v56 = vpop.f32.mrf.mxu0 }
 0x904   : > { %2025 = vrot.lane.b32.xlu0 %v1639_v55, %s3815_s13  ;;  %1908 = vrot.lane.b32.xlu1 %v1639_v55, %s3812_s20 }
 0x905   : > { %3053 = vmatmul.mubr.msk.bf16.vlgmr.msra.gmra.mxu1 %vm974_vm2, %v1639_v55  ;;  %v3033_v58 = vpop.f32.mrf.mxu0 }
 0x906   : > { %3063 = vmatpush3.bf16.xpose.msra.mxu1 %v1917_v57  ;;  %3064 = vmatprep.mubr.msk.bf16.mxu1 %vm3810_vm1, %v3809_v8 }
 0x907   : > { %v1781_v60 = vpop.f32.mrf.mxu0  ;;  %3074 = vmatprep.subr.bf16.mxu1 %v3809_v8 }
 0x908   : > { %v4380_v62 = vpack.c.bf16 %v1781_v60, %v1781_v60  ;;  %2140 = vrot.lane.b32.xlu0 %v1639_v55, %s3817_s1  ;;  %2142 = vrot.lane.b32.xlu1 %v1730_v46, %s3817_s1 }
 0x909   : > { %v3048_v2 = vpop.f32.mrf.mxu0 }
 0x90a   : > { %v1864_v3 = vsel %vm1042_vm3, %v4380_v62, 0  ;;  %v2255_v47 = vunpack.c.l.bf16 %v4380_v62 }
 0x90b   : > { %v1784_v1 = vpop.f32.mrf.mxu0  ;;  %3057 = vmatpush3.bf16.msra.mxu0 %v1864_v3 }
 0x90c   : > { %3068 = vmatprep.subr.bf16.mxu0 %v3809_v8  ;;  %v2256_v52 = vsel %vm861_vm0, %v2255_v47, 0.0 }
 0x90d   : > { %v3049_v4 = vpop.f32.mrf.mxu0  ;;  %v2257_v56 = vrot.slane %v2256_v52, 4 }
 0x90f   : > { %v2258_v58 = vadd.f32 %v2257_v56, %v2256_v52 }
 0x911   : > { %v2259_v4 = vrot.slane %v2258_v58, 2 }
 0x976   : > { %v1909_v9 = vpop.permute.xlu1 %1908  ;;  %v2026_v12 = vpop.permute.xlu0 %2025 }
 0x977   : > { %3065 = vmatmul.mubr.msk.bf16.vlgmr.msra.gmra.mxu1 %vm974_vm2, %v1909_v9  ;;  %v2260_v9 = vadd.f32 %v2259_v4, %v2258_v58 }
 0x978   : > { %3075 = vmatpush3.bf16.xpose.msra.mxu1 %v2033_v10  ;;  %3076 = vmatprep.mubr.msk.bf16.mxu1 %vm3810_vm1, %v3809_v8 }
 0x979   : > { %3086 = vmatprep.subr.bf16.mxu1 %v3809_v8 }
 0x97a   : > { %v2143_v11 = vpop.permute.xlu1 %2142  ;;  %v2141_v15 = vpop.permute.xlu0 %2140 }
 0x97b   : > { %v2148_v13 = vsel %vm974_vm2, %v2143_v11, 0 }
 0x97f   : > { %3077 = vmatmul.mubr.msk.bf16.vlgmr.msra.gmra.mxu1 %vm974_vm2, %v2026_v12 }
 0x980   : > { %3087 = vmatpush3.bf16.xpose.msra.mxu1 %v2148_v13  ;;  %3088 = vmatprep.mubr.msk.bf16.mxu1 %vm3810_vm1, %v3809_v8 }
 0x981   : > { %3098 = vmatprep.subr.bf16.mxu1 %v3809_v8 }
 0x987   : > { %3089 = vmatmul.mubr.msk.bf16.vlgmr.msra.gmra.mxu1 %vm974_vm2, %v2141_v15  ;;  %v2261_v15 = vrot.slane %v2260_v9, 1 }
 0x988   : > { %3102 = vmatprep.mubr.msk.bf16.mxu1 %vm3810_vm1, %v3809_v8 }
 0x9c5   : > { %v1838_v16 = vpop.f32.mrf.mxu1 }
 0x9c6   : > { %v1844_v17 = vsel %vm974_vm2, %v1838_v16, -inf }
 0x9c7   : > { %1845 = vmax.xlane.f32.xlu1 %v1844_v17  ;;  %v3054_v0 = vpop.f32.mrf.mxu1 }
 0x9c9   : > { %v1841_v59 = vpop.f32.mrf.mxu1 }
 0x9cb   : > { %v3055_v18 = vpop.f32.mrf.mxu1 }
 0x9d8   : > { %2091 = vrot.lane.b32.xlu1 %v4380_v62, %s3815_s13 }
 0xa37   : > { %v1953_v19 = vpop.f32.mrf.mxu1 }
 0xa38   : > { %v1959_v20 = vsel %vm974_vm2, %v1953_v19, -inf }
 0xa39   : > { %1960 = vmax.xlane.f32.xlu0 %v1959_v20  ;;  %v3066_v21 = vpop.f32.mrf.mxu1 }
 0xa3b   : > { %v1956_v23 = vpop.f32.mrf.mxu1 }
 0xa3d   : > { %v3067_v24 = vpop.f32.mrf.mxu1 }
 0xa3f   : > { %v2069_v25 = vpop.f32.mrf.mxu1 }
 0xa40   : > { %v2075_v26 = vsel %vm974_vm2, %v2069_v25, -inf }
 0xa41   : > { %2076 = vmax.xlane.f32.xlu0 %v2075_v26  ;;  %v3078_v27 = vpop.f32.mrf.mxu1 }
 0xa43   : > { %v2072_v28 = vpop.f32.mrf.mxu1 }
 0xa45   : > { %v3079_v29 = vpop.f32.mrf.mxu1 }
 0xa47   : > { %v2184_v30 = vpop.f32.mrf.mxu1 }
 0xa48   : > { %v2190_v31 = vsel %vm974_vm2, %v2184_v30, -inf }
 0xa49   : > { %v3090_v32 = vpop.f32.mrf.mxu1  ;;  %2191 = vmax.xlane.f32.xlu1 %v2190_v31 }
 0xa4b   : > { %v2187_v33 = vpop.f32.mrf.mxu1 }
 0xa4d   : > { %v3091_v34 = vpop.f32.mrf.mxu1 }
 0xa50   : > { %v4406_v35 = vpop.xlane.xlu1 %1845 }
 0xa51   : > { %v1850_v36 = vsub.f32 %v1838_v16, %v4406_v35  ;;  %v2262_v16 = vadd.f32 %v2261_v15, %v2260_v9  ;;  %v1847_v0 = vsub.f32 -inf, %v4406_v35 }
 0xa53   : > { %v1851_v37 = vmul.f32 1.442695, %v1850_v36  ;;  %v2265_v17 = vmul.f32 1.25e-07, %v2262_v16  ;;  %v1848_v59 = vmul.f32 1.442695, %v1847_v0 }
 0xa54   : > { %v2092_v44 = vpop.permute.xlu1 %2091 }
 0xa55   : > { %3361 = vpow2.f32 %v1851_v37  ;;  %v2097_v57 = vsel %vm1042_vm3, %v2092_v44, 0 }
 0xa57   : > { %1976 = vrot.lane.b32.xlu0 %v4380_v62, %s3812_s20 }
 0xa5a   : > { %2206 = vrot.lane.b32.xlu1 %v4380_v62, %s3817_s1 }
 0xa62   : > { %v3362_v22 = vpop.eup %3361 }
 0xa63   : > { %v4416_v39 = vmul.f32 %v3362_v22, %v1796_v38 }
 0xa65   : > { %v1859_v40 = vpack.c.bf16 %v4416_v39, %v4416_v39  ;;  %v1855_v18 = vsel %vm974_vm2, %v4416_v39, 0.0 }
 0xa67   : > { %3059 = vmatmul.mubr.msk.bf16.vlgmr.msra.gmra.mxu0 %vm974_vm2, %v1859_v40 }
 0xa68   : > { %3070 = vmatprep.mubr.msk.bf16.mxu0 %vm3810_vm1, %v3809_v8 }
 0xac2   : > { %v4423_v41 = vpop.xlane.xlu0 %1960 }
 0xac3   : > { %v1965_v42 = vsub.f32 %v1953_v19, %v4423_v41  ;;  %v1962_v28 = vsub.f32 -inf, %v4423_v41 }
 0xac5   : > { %v1966_v43 = vmul.f32 1.442695, %v1965_v42  ;;  %v1963_v29 = vmul.f32 1.442695, %v1962_v28 }
 0xac7   : > { %3363 = vpow2.f32 %v1966_v43 }
 0xaca   : > { %v4426_v7 = vpop.xlane.xlu0 %2076 }
 0xacb   : > { %v2081_v61 = vsub.f32 %v2069_v25, %v4426_v7 }
 0xacd   : > { %v2082_v5 = vmul.f32 1.442695, %v2081_v61 }
 0xace   : > { %v1977_v45 = vpop.permute.xlu0 %1976 }
 0xacf   : > { %v1982_v46 = vsel %vm1042_vm3, %v1977_v45, 0  ;;  %3365 = vpow2.f32 %v2082_v5 }
 0xad0   : > { %3069 = vmatpush3.bf16.msra.mxu0 %v1982_v46 }
 0xad1   : > { %3080 = vmatprep.subr.bf16.mxu0 %v3809_v8 }
 0xad2   : > { %v4432_v48 = vpop.xlane.xlu1 %2191 }
 0xad3   : > { %v2196_v49 = vsub.f32 %v2184_v30, %v4432_v48  ;;  %v2078_v30 = vsub.f32 -inf, %v4426_v7  ;;  %v2193_v32 = vsub.f32 -inf, %v4432_v48 }
 0xad4   : > { %v3364_v50 = vpop.eup %3363 }
 0xad5   : > { %v2197_v51 = vmul.f32 1.442695, %v2196_v49  ;;  %v1968_v53 = vmul.f32 %v3364_v50, %v1796_v38  ;;  %v2079_v31 = vmul.f32 1.442695, %v2078_v30  ;;  %v2194_v33 = vmul.f32 1.442695, %v2193_v32 }
 0xad6   : > { %v2207_v2 = vpop.permute.xlu1 %2206 }
 0xad7   : > { %3367 = vpow2.f32 %v2197_v51  ;;  %v1970_v54 = vsel %vm974_vm2, %v1968_v53, 0.0  ;;  %v1974_v55 = vpack.c.bf16 %v1968_v53, %v1968_v53  ;;  %v2212_v6 = vsel %vm1042_vm3, %v2207_v2, 0  ;;  %v3320_v2 = vld [vmem:[#allocation15] sm:$0xff]  }
 0xad8   : > { %1971 = vadd.xlane.f32.xlu0 %v1970_v54  ;;  %3369 = vpow2.f32 %v1848_v59 }
 0xad9   : > { %3071 = vmatmul.mubr.msk.bf16.vlgmr.msra.gmra.mxu0 %vm974_vm2, %v1974_v55  ;;  %3371 = vpow2.f32 %v1963_v29 }
 0xada   : > { %3081 = vmatpush3.bf16.msra.mxu0 %v2097_v57  ;;  %3082 = vmatprep.mubr.msk.bf16.mxu0 %vm3810_vm1, %v3809_v8  ;;  %3373 = vpow2.f32 %v2079_v31  ;;  %v3319_v57 = vld [vmem:[#allocation15 + $0x8] sm:$0xff]  }
 0xadb   : > { %3092 = vmatprep.subr.bf16.mxu0 %v3809_v8  ;;  %3375 = vpow2.f32 %v2194_v33  ;;  %3099 = vmatpush3.bf16.msra.mxu1 %v3319_v57 }
 0xadc   : > { %v3366_v60 = vpop.eup %3365  ;;  %3100 = vmatprep.subr.bf16.mxu1 %v3809_v8 }
 0xadd   : > { %v2084_v62 = vmul.f32 %v3366_v60, %v1796_v38 }
 0xadf   : > { %v2086_v3 = vsel %vm974_vm2, %v2084_v62, 0.0  ;;  %v2090_v1 = vpack.c.bf16 %v2084_v62, %v2084_v62  ;;  %3101 = vmatpush3.bf16.msra.mxu1 %v3320_v2 }
 0xae0   : > { %2087 = vadd.xlane.f32.xlu1 %v2086_v3  ;;  %3114 = vmatprep.subr.bf16.mxu1 %v3809_v8 }
 0xae1   : > { %3083 = vmatmul.mubr.msk.bf16.vlgmr.msra.gmra.mxu0 %vm974_vm2, %v2090_v1 }
 0xae2   : > { %3093 = vmatpush3.bf16.msra.mxu0 %v2212_v6  ;;  %3094 = vmatprep.mubr.msk.bf16.mxu0 %vm3810_vm1, %v3809_v8 }
 0xae3   : > { %3106 = vmatprep.subr.bf16.mxu0 %v3809_v8 }
 0xae4   : > { %v3368_v10 = vpop.eup %3367 }
 0xae5   : > { %v2199_v11 = vmul.f32 %v3368_v10, %v1796_v38  ;;  %v3370_v19 = vpop.eup %3369 }
 0xae6   : > { %v1854_v20 = vmul.f32 0.0, %v3370_v19  ;;  %v3372_v34 = vpop.eup %3371 }
 0xae7   : > { %v2201_v12 = vsel %vm974_vm2, %v2199_v11, 0.0  ;;  %v2205_v13 = vpack.c.bf16 %v2199_v11, %v2199_v11  ;;  %v1969_v36 = vmul.f32 0.0, %v3372_v34  ;;  %v3374_v14 = vpop.eup %3373 }
 0xae8   : > { %2202 = vadd.xlane.f32.xlu0 %v2201_v12  ;;  %v2085_v39 = vmul.f32 0.0, %v3374_v14  ;;  %v3376_v41 = vpop.eup %3375  ;;  %v3322_v14 = vld [vmem:[#allocation20] sm:$0xff]  }
 0xae9   : > { %3095 = vmatmul.mubr.msk.bf16.vlgmr.msra.gmra.mxu0 %vm974_vm2, %v2205_v13  ;;  %v2200_v7 = vmul.f32 0.0, %v3376_v41 }
 0xaea   : > { %3110 = vmatprep.mubr.msk.bf16.mxu0 %vm3810_vm1, %v3809_v8 }
 0xaf1   : > { %2284 = vrot.lane.b32.xlu1 %v2265_v17, %s3815_s13 }
 0xaf5   : > { %2296 = vrot.lane.b32.xlu1 %v2265_v17, %s3817_s1  ;;  %s4657_s1 = sld [smem:[#allocation50_spill]] }
 0xafe   : > { %2272 = vrot.lane.b32.xlu0 %v2265_v17, %s3812_s20 }
 0xb1d   : > { %1856 = vadd.xlane.f32.xlu0 %v1855_v18 }
 0xb27   : > { %v1900_v21 = vpop.f32.mrf.mxu0 }
 0xb28   : > { %v1906_v23 = vadd.f32 %v1900_v21, %v1854_v20 }
 0xb29   : > { %v3060_v24 = vpop.f32.mrf.mxu0 }
 0xb2a   : > { %v4458_v25 = vadd.f32 %v2265_v17, %v1906_v23 }
 0xb2b   : > { %v1903_v26 = vpop.f32.mrf.mxu0 }
 0xb2d   : > { %v3061_v27 = vpop.f32.mrf.mxu0 }
 0xb61   : > { %v1972_v35 = vpop.xlane.xlu0 %1971 }
 0xb62   : > { %v1973_v37 = vadd.f32 %v1972_v35, %v1969_v36 }
 0xb64   : > { %v2269_v38 = vadd.f32 1e-06, %v1973_v37  ;;  %v3321_v37 = vld [vmem:[#allocation20 + $0x8] sm:$0xff]  }
 0xb65   : > { %3107 = vmatpush3.bf16.msra.mxu0 %v3321_v37 }
 0xb66   : > { %3377 = vrcp.f32 %v2269_v38  ;;  %3108 = vmatprep.subr.bf16.mxu0 %v3809_v8 }
 0xb69   : > { %v2088_v22 = vpop.xlane.xlu1 %2087  ;;  %3109 = vmatpush3.bf16.msra.mxu0 %v3322_v14 }
 0xb6a   : > { %v2089_v40 = vadd.f32 %v2088_v22, %v2085_v39 }
 0xb6c   : > { %v2282_v42 = vadd.f32 1e-06, %v2089_v40  ;;  %v2879_v40 = vld [vmem:[#allocation17] ss:$0 sm:$0xff] }
 0xb6d   : > { %v2285_v55 = vpop.permute.xlu1 %2284 }
 0xb6e   : > { %3379 = vrcp.f32 %v2282_v42  ;;  %v2880_v42 = vld [vmem:[#allocation18] ss:$0 sm:$0xff] }
 0xb71   : > { %v2203_v43 = vpop.xlane.xlu0 %2202  ;;  %v2297_v12 = vpop.permute.xlu1 %2296 }
 0xb72   : > { %v2204_v61 = vadd.f32 %v2203_v43, %v2200_v7 }
 0xb73   : > { %v3378_v49 = vpop.eup %3377 }
 0xb74   : > { %v2294_v47 = vadd.f32 1e-06, %v2204_v61 }
 0xb75   : > { %v2273_v45 = vpop.permute.xlu0 %2272 }
 0xb76   : > { %3381 = vrcp.f32 %v2294_v47  ;;  %v3327_v47 = vld [vmem:[%s4583_s18 + $0x18] sm:$0xff]  }
 0xb7b   : > { %v3380_v60 = vpop.eup %3379 }
 0xb83   : > { %v3382_v16 = vpop.eup %3381 }
 0xb99   : > { %v2018_v5 = vpop.f32.mrf.mxu0 }
 0xb9a   : > { %v2024_v44 = vadd.f32 %v2018_v5, %v1969_v36  ;;  %v3323_v5 = vld [vmem:[%s4583_s18 + $0x38] sm:$0xff]  }
 0xb9b   : > { %v3072_v46 = vpop.f32.mrf.mxu0 }
 0xb9c   : > { %v2275_v48 = vadd.f32 %v2273_v45, %v2024_v44  ;;  %v3324_v44 = vld [vmem:[%s4583_s18 + $0x30] sm:$0xff]   ;;  %v3325_v45 = vld [vmem:[%s4583_s18 + $0x28] sm:$0xff]   ;;  %v3326_v46 = vld [vmem:[%s4583_s18 + $0x20] sm:$0xff]  }
 0xb9d   : > { %v2021_v50 = vpop.f32.mrf.mxu0 }
 0xb9e   : > { %v2276_v51 = vmul.f32 %v3378_v49, %v2275_v48  ;;  %v3328_v48 = vld [vmem:[%s4583_s18 + $0x10] sm:$0xff]   ;;  %v3329_v49 = vld [vmem:[%s4583_s18 + $0x8] sm:$0xff]   ;;  %v3330_v50 = vld [vmem:[%s4583_s18] sm:$0xff]  }
 0xb9f   : > { %v3073_v52 = vpop.f32.mrf.mxu0 }
 0xba0   : > { %2278 = vrot.lane.b32.xlu1 %v2276_v51, %s3822_s16  ;;  %v2881_v51 = vld [vmem:[#allocation21] ss:$0 sm:$0xff]  ;;  %s2624_s16 = scalar_lea.hbm %s4657_s1, %s2897_s25 }
 0xba1   : > { %v2133_v53 = vpop.f32.mrf.mxu0 }
 0xba2   : > { %v2139_v54 = vadd.f32 %v2133_v53, %v2085_v39 }
 0xba3   : > { %v3084_v56 = vpop.f32.mrf.mxu0 }
 0xba4   : > { %v2287_v58 = vadd.f32 %v2285_v55, %v2139_v54 }
 0xba5   : > { %v2136_v62 = vpop.f32.mrf.mxu0 }
 0xba6   : > { %v1857_v3 = vpop.xlane.xlu0 %1856  ;;  %v2288_v1 = vmul.f32 %v3380_v60, %v2287_v58 }
 0xba7   : > { %v1858_v4 = vadd.f32 %v1857_v3, %v1854_v20  ;;  %v3085_v6 = vpop.f32.mrf.mxu0 }
 0xba8   : > { %2290 = vrot.lane.b32.xlu1 %v2288_v1, %s3823_s9  ;;  %s2837_s9 = sshll.u32 %s4147_s14, 3 }
 0xba9   : > { %v2263_v9 = vadd.f32 1e-06, %v1858_v4  ;;  %v2248_v10 = vpop.f32.mrf.mxu0  ;;  %s850_s5 = scalar_lea.vmem [#allocation23], %s2837_s9 }
 0xbaa   : > { %v2254_v11 = vadd.f32 %v2248_v10, %v2200_v7  ;;  %s2626_s4 = sshll.u32 %s850_s5, 4  ;;  %s2627_s4 = int_to_ptr.vmem [resolvable:$true] %s2626_s4 }
 0xbab   : > { %3383 = vrcp.f32 %v2263_v9  ;;  %v3096_v13 = vpop.f32.mrf.mxu0 }
 0xbac   : > { %v2299_v15 = vadd.f32 %v2297_v12, %v2254_v11 }
 0xbad   : > { %v2251_v17 = vpop.f32.mrf.mxu0 }
 0xbae   : > { %v2300_v0 = vmul.f32 %v3382_v16, %v2299_v15 }
 0xbaf   : > { %v3097_v59 = vpop.f32.mrf.mxu0 }
 0xbb0   : > { %2302 = vrot.lane.b32.xlu1 %v2300_v0, %s3824_s17  ;;  %s3705_s17 = scalar_lea.vmem %s2627_s4, 128 }
 0xbb1   : > { %p3706_p7 = scmp.ne.s32.totalorder %s2627_s4, %s3705_s17 }
 0xbb3   : > { %p3707_p6 = pnand %p3706_p7, %p4658_p12 }
 0xbb5   : > { %p3708_p5 = pneg %p3707_p6 }
 0xbb8   : > { %v3384_v18 = vpop.eup %3383 }
 0xbb9   : > { %v2267_v19 = vmul.f32 %v3384_v18, %v4458_v25 }
 0xbbb   : > { %2268 = vst.msk [vmem:[#allocation2] sm:$0xff] %vm974_vm2, %v2267_v19 }
 0xc12   : > { %v2279_v20 = vpop.permute.xlu1 %2278 }
 0xc13   : > { %2281 = vst.msk [vmem:[#allocation2] sm:$0xff] %vm1463_vm7, %v2279_v20 }
 0xc1a   : > { %v2291_v21 = vpop.permute.xlu1 %2290 }
 0xc1b   : > { %2293 = vst.msk [vmem:[#allocation2] sm:$0xff] %vm1476_vm8, %v2291_v21 }
 0xc22   : > { %v2303_v23 = vpop.permute.xlu1 %2302 }
 0xc23   : > { %2305 = vst.msk [vmem:[#allocation2] sm:$0xff] %vm1489_vm9, %v2303_v23 }
 0xc2a   : > { %v2306_v24 = vld [vmem:[#allocation2] sm:$0xff] }
 0xc2b   : > { %v2307_v26 = vpack.c.bf16 %v2306_v24, %v2306_v24 }
 0xc2d   : > { %3103 = vmatmul.mubr.msk.bf16.vlgmr.msra.gmra.mxu1 %vm861_vm0, %v2307_v26 }
 0xc2e   : > { %3130 = vmatprep.mubr.msk.bf16.mxu1 %vm3810_vm1, %v3809_v8  ;;  %3115 = vmatpush3.bf16.msra.mxu1 %v3323_v5 }
 0xc2f   : > { %3116 = vmatprep.subr.bf16.mxu1 %v3809_v8 }
 0xc32   : > { %3117 = vmatpush3.bf16.msra.mxu1 %v3324_v44 }
 0xc33   : > { %3118 = vmatprep.subr.bf16.mxu1 %v3809_v8 }
 0xc36   : > { %3119 = vmatpush3.bf16.msra.mxu1 %v3325_v45 }
 0xc37   : > { %3120 = vmatprep.subr.bf16.mxu1 %v3809_v8 }
 0xc3a   : > { %3121 = vmatpush3.bf16.msra.mxu1 %v3326_v46 }
 0xc3b   : > { %3122 = vmatprep.subr.bf16.mxu1 %v3809_v8 }
 0xc3e   : > { %3123 = vmatpush3.bf16.msra.mxu1 %v3327_v47 }
 0xc3f   : > { %3124 = vmatprep.subr.bf16.mxu1 %v3809_v8 }
 0xc42   : > { %3125 = vmatpush3.bf16.msra.mxu1 %v3328_v48 }
 0xc43   : > { %3126 = vmatprep.subr.bf16.mxu1 %v3809_v8 }
 0xc46   : > { %3127 = vmatpush3.bf16.msra.mxu1 %v3329_v49 }
 0xc47   : > { %3128 = vmatprep.subr.bf16.mxu1 %v3809_v8  ;;  %v2885_v8 = vld [vmem:[%s4584_s19] ss:$0 sm:$0xff] }
 0xc4a   : > { %3129 = vmatpush3.bf16.msra.mxu1 %v3330_v50 }
 0xced   : > { %v2357_v27 = vpop.f32.mrf.mxu1 }
 0xcee   : > { %v4477_v25 = vadd.f32 %v2357_v27, %v4329_v63  ;;  %v2894_v27 = vld [vmem:[%s4655_s0] ss:$0 sm:$0xff]  ;;  %s3709_s0 = sshll.u32 %s3825_s22, 4  ;;  %s3710_s0 = int_to_ptr.vmem [resolvable:$false] %s3709_s0 }
 0xcef   : > { %v3104_v28 = vpop.f32.mrf.mxu1  ;;  %s3711_s23 = scalar_lea.vmem %s3710_s0, 256  ;;  %p3712_p2 = scmp.lt.s32.totalorder %s2627_s4, %s3710_s0 }
 0xcf0   : > { %v2366_v29 = vsel %vm861_vm0, %v4477_v25, 0.0  ;;  %v2895_v28 = vld [vmem:[%s4656_s27] ss:$0 sm:$0xff]  ;;  %p3713_p10 = scmp.lt.s32.totalorder %s3711_s23, %s3705_s17 }
 0xcf1   : > { %2367 = vadd.xlane.f32.xlu1 %v2366_v29  ;;  %v2360_v30 = vpop.f32.mrf.mxu1 }
 0xcf2   : > { %p3714_p11 = por %p3713_p10, %p3712_p2 }
 0xcf3   : > { %v3105_v31 = vpop.f32.mrf.mxu1 }
 0xcf4   : > { %p3715_p1 = pnand %p3714_p11, %p3708_p5 }
 0xd7a   : > { %v2368_v32 = vpop.xlane.xlu1 %2367 }
 0xd7b   : > { %v2369_v33 = vmul.f32 0.03125, %v2368_v32 }
 0xd7d   : > { %v2370_v34 = vsub.f32 %v4477_v25, %v2369_v33 }
 0xd7f   : > { %v2371_v35 = vmul.f32 %v2370_v34, %v2370_v34 }
 0xd81   : > { %v2372_v36 = vsel %vm861_vm0, %v2371_v35, 0.0 }
 0xd82   : > { %2373 = vadd.xlane.f32.xlu0 %v2372_v36 }
 0xe0b   : > { %v2374_v63 = vpop.xlane.xlu0 %2373 }
 0xe0c   : > { %v2375_v38 = vmul.f32 0.03125, %v2374_v63 }
 0xe0e   : > { %v2376_v22 = vadd.f32 1e-05, %v2375_v38 }
 0xe10   : > { %3385 = vrsqrt.f32 %v2376_v22 }
 0xe1d   : > { %v3386_v39 = vpop.eup %3385 }
 0xe1e   : > { %v2378_v41 = vmul.f32 %v3386_v39, %v2370_v34 }
 0xe20   : > { %v2385_v43 = vmul.f32 %v2879_v40, %v2378_v41 }
 0xe22   : > { %v2392_v7 = vadd.f32 %v2880_v42, %v2385_v43 }
 0xe24   : > { %v2393_v61 = vpack.c.bf16 %v2392_v7, %v2392_v7 }
 0xe26   : > { %3111 = vmatmul.mubr.msk.bf16.vlgmr.msra.gmra.mxu0 %vm861_vm0, %v2393_v61 }
 0xee6   : > { %v2454_v52 = vpop.f32.mrf.mxu0 }
 0xee7   : > { %v2455_v53 = vadd.f32 %v2881_v51, %v2454_v52 }
 0xee8   : > { %v3112_v54 = vpop.f32.mrf.mxu0 }
 0xee9   : > { %v2460_v55 = vmul.f32 %v2455_v53, %v2455_v53 }
 0xeea   : > { %v2457_v56 = vpop.f32.mrf.mxu0 }
 0xeeb   : > { %v2461_v57 = vmul.f32 %v2460_v55, %v2455_v53 }
 0xeec   : > { %v3113_v58 = vpop.f32.mrf.mxu0 }
 0xeed   : > { %v2462_v60 = vmul.f32 0.044715, %v2461_v57 }
 0xeef   : > { %v2463_v62 = vadd.f32 %v2462_v60, %v2455_v53 }
 0xef1   : > { %v2464_v2 = vmul.f32 0.7978846, %v2463_v62 }
 0xef3   : > { %3387 = vtanh.f32 %v2464_v2 }
 0xf00   : > { %v3388_v3 = vpop.eup %3387 }
 0xf01   : > { %v2466_v1 = vadd.f32 1.0, %v3388_v3 }
 0xf03   : > { %v2467_v4 = vmul.f32 0.5, %v2466_v1 }
 0xf05   : > { %v2468_v6 = vmul.f32 %v2467_v4, %v2455_v53 }
 0xf07   : > { %v2469_v9 = vpack.c.bf16 %v2468_v6, %v2468_v6 }
 0xf09   : > { %3131 = vmatmul.mubr.bf16.vlgmr.msra.gmra.mxu1 %v2469_v9 }
 0xfc9   : > { %v2575_v10 = vpop.f32.mrf.mxu1 }
 0xfca   : > { %v2576_v11 = vadd.f32 %v2885_v8, %v2575_v10 }
 0xfcb   : > { %v3132_v12 = vpop.f32.mrf.mxu1 }
 0xfcc   : > { %v2581_v13 = vadd.f32 %v2576_v11, %v4477_v25 }
 0xfcd   : > { %v2578_v15 = vpop.f32.mrf.mxu1 }
 0xfce   : > { %v2584_v16 = vsel %vm861_vm0, %v2581_v13, 0.0 }
 0xfcf   : > { %2585 = vadd.xlane.f32.xlu0 %v2584_v16  ;;  %v3133_v17 = vpop.f32.mrf.mxu1 }
0x1058   : > { %v2586_v0 = vpop.xlane.xlu0 %2585 }
0x1059   : > { %v2587_v59 = vmul.f32 0.03125, %v2586_v0 }
0x105b   : > { %v2588_v18 = vsub.f32 %v2581_v13, %v2587_v59 }
0x105d   : > { %v2589_v19 = vmul.f32 %v2588_v18, %v2588_v18 }
0x105f   : > { %v2590_v20 = vsel %vm861_vm0, %v2589_v19, 0.0 }
0x1060   : > { %2591 = vadd.xlane.f32.xlu0 %v2590_v20 }
0x10e9   : > { %v2592_v21 = vpop.xlane.xlu0 %2591 }
0x10ea   : > { %v2593_v23 = vmul.f32 0.03125, %v2592_v21 }
0x10ec   : > { %v2594_v24 = vadd.f32 1e-05, %v2593_v23 }
0x10ee   : > { %3389 = vrsqrt.f32 %v2594_v24 }
0x10fb   : > { %v3390_v26 = vpop.eup %3389 }
0x10fc   : > { %v2596_v25 = vmul.f32 %v3390_v26, %v2588_v18 }
0x10fe   : > { %v2603_v29 = vmul.f32 %v2894_v27, %v2596_v25 }
0x1100   : > { %v2610_v30 = vadd.f32 %v2895_v28, %v2603_v29 }
0x1102   : > { %2611 = vst.msk [vmem:[%s850_s5] sm:$0xff] %vm861_vm0, %v2610_v30 }
0x1103   : > { %3718 = shalt.err (!%p3715_p1)
}
0x1104   : > { %s3719_s9 = scalar_lea.hbm %s2624_s16, 128  ;;  %s3723_s15 = scalar_lea.hbm %s4657_s1, 256 }
0x1105   : > { %p3720_p3 = scmp.ne.s32.totalorder %s2624_s16, %s3719_s9  ;;  %p3724_p4 = scmp.lt.s32.totalorder %s2624_s16, %s4657_s1 }
0x1106   : > { %p3725_p8 = scmp.lt.s32.totalorder %s3723_s15, %s3719_s9 }
0x1107   : > { %p3721_p13 = pnand %p3720_p3, %p4658_p12 }
0x1108   : > { %p3726_p9 = por %p3725_p8, %p3724_p4 }
0x1109   : > { %p3722_p0 = pneg %p3721_p13 }
0x110b   : > { %p3727_p7 = pnand %p3726_p9, %p3722_p0 }
0x110d   : > { %3730 = shalt.err (!%p3727_p7)
}
0x110e   : > { %3180 = dma.vmem_to_hbm [thread:$0]  (%p4658_p12), %s2627_s4, 128, %s2624_s16, %s2613_s7  }
0x110f PF: > { %s2638_s5 = sand.u32 1, %s3781_s3   ;;  %p4659_p6 = scmp.ne.s32.totalorder %s4635_s21, 0 }
0x1110   : > { %p4660_p5 = scmp.ge.s32.totalorder %s3793_s30, 2  ;;  %s2639_s20 = scalar_lea.sflag [#allocation5], %s2638_s5 }
0x1112   : > { %p3221_p2 = pnand %p4660_p5, %p4659_p6 }
0x1114   : > { %p3222_p10 = pneg %p3221_p2 }
0x1116   : > { %3776 = dma.done.wait (%p3222_p10), %s2639_s20, 128  }
0x1117   : > { %3778 = vsyncadd (%p3222_p10), %s2639_s20, 4294967168  ;;  %s4661_s13 = sld [smem:[#allocation32_spill]]  ;;  %p41_p11 = scmp.ge.s32.totalorder %s4090_s26, 4  }
0x1118   : > { %s4662_s3 = smov %s3785_s28  ;;  %s4663_s28 = smov %s3789_s29 }
0x1119   : > { %s4665_s30 = smov %s4090_s26  ;;  %43 = sbr.rel (!%p41_p11) target bundleno = 30 (0x1e), region = 200 }
0x111d   : > { %s4664_s29 = smov %s4661_s13 }
0x111e   :  { %2644 = vsyncpa [#allocation4], 1 }
0x111f   :  { %2646 = vsyncpa [#allocation4 + $0x1], 1 }
0x1120   :  { %2647 = vsyncpa [#allocation7], 1 }
0x1121   :  { %2648 = vsyncpa [#allocation10], 1 }
0x1122   :  { %2649 = vsyncpa [#allocation13], 1 }
0x1123   :  { %2650 = vsyncpa [#allocation16], 1 }
0x1124   :  { %2651 = vsyncpa [#allocation19], 1 }
0x1125   :  { %2652 = vsyncpa [#allocation22], 1 }
0x1126   :  { %2653 = vsyncpa [#allocation5], 1 }
0x1127   :  { %2655 = vsyncpa [#allocation5 + $0x1], 1 }

</bundles_post_ra>
